<compile_context>
chip_gen: v7x
topology: tpu7x:2x2x1
jax: 0.10.0
libtpu: 0.0.40
codegen_flags: <defaults>
</compile_context>

<pallas_src>
import math

import numpy as np
import jax
import jax.numpy as jnp
from jax.experimental import pallas as pl
from jax.experimental.pallas import tpu as pltpu

WINDOW_SIZE = 11
EPS = 1e-8          # same epsilon the reference L2_NORM uses
LANE = 128
_SUBLANE = 8
_MAX_TILE_ROWS = 512
_VMEM_LIMIT = 32 * 1024 * 1024


def _gaussian_1d(window_size: int, sigma: float) -> np.ndarray:
    g = np.array(
        [math.exp(-((x - window_size // 2) ** 2) / float(2 * sigma ** 2))
         for x in range(window_size)],
        dtype=np.float64,
    )
    return (g / g.sum()).astype(np.float32)


# create_window(11, channel) in the reference => gaussian(11, 11/6).
_W1D = _gaussian_1d(WINDOW_SIZE, WINDOW_SIZE / 6.0)


def _band_matrices(H: int, W: int):
    """LEFT (Ho,H) / RIGHT (W,Wo) so that LEFT @ X @ RIGHT == valid conv2d(X, outer(w,w))."""
    ws = WINDOW_SIZE
    Ho, Wo = H - ws + 1, W - ws + 1
    left = np.zeros((Ho, H), np.float32)
    for r in range(Ho):
        left[r, r:r + ws] = _W1D
    right = np.zeros((W, Wo), np.float32)
    for c in range(Wo):
        right[c:c + ws, c] = _W1D
    return left, right


def _round_up(x: int, m: int) -> int:
    return ((x + m - 1) // m) * m


def _sum_all_2d(x):
    # (R, C) -> (1, 1), two-stage keepdims reduction (Mosaic-friendly).
    return jnp.sum(jnp.sum(x, axis=1, keepdims=True), axis=0, keepdims=True)


# ------------------------- pass 1: streaming global moments ------------------------
def _stats_kernel(y1_ref, y2_ref,
                  d11_ref, d22_ref, d12_ref, sd1_ref, sd2_ref, y11_ref, y22_ref):
    i = pl.program_id(0)

    @pl.when(i == 0)
    def _():
        for r in (d11_ref, d22_ref, d12_ref, sd1_ref, sd2_ref, y11_ref, y22_ref):
            r[...] = jnp.zeros((1, 1), jnp.float32)

    y1 = y1_ref[...]
    y2 = y2_ref[...]
    miu = (y1 + y2) * 0.5
    d1 = y1 - miu
    d2 = y2 - miu
    d11_ref[...] += _sum_all_2d(d1 * d1)
    d22_ref[...] += _sum_all_2d(d2 * d2)
    d12_ref[...] += _sum_all_2d(d1 * d2)
    sd1_ref[...] += _sum_all_2d(d1)
    sd2_ref[...] += _sum_all_2d(d2)
    y11_ref[...] += _sum_all_2d(y1 * y1)
    y22_ref[...] += _sum_all_2d(y2 * y2)


# ----------------------- pass 2: y_hat + its global min / max ----------------------
def _yhat_kernel(coef_ref, y1_ref, y2_ref, yhat_ref, min_ref, max_ref):
    i = pl.program_id(0)
    g1 = coef_ref[0]     # c_hat * w1 / (c1 * (w1+w2) * ||s_bar||)
    g2 = coef_ref[1]     # c_hat * w2 / (c2 * (w1+w2) * ||s_bar||)

    y1 = y1_ref[...]
    y2 = y2_ref[...]
    miu = (y1 + y2) * 0.5
    y_hat = g1 * (y1 - miu) + g2 * (y2 - miu) + (y2 + miu) * 0.5
    yhat_ref[...] = y_hat

    tile_min = jnp.min(jnp.min(y_hat, axis=1, keepdims=True), axis=0, keepdims=True)
    tile_max = jnp.max(jnp.max(y_hat, axis=1, keepdims=True), axis=0, keepdims=True)

    @pl.when(i == 0)
    def _():
        min_ref[...] = jnp.full((1, 1), jnp.inf, jnp.float32)
        max_ref[...] = jnp.full((1, 1), -jnp.inf, jnp.float32)

    min_ref[...] = jnp.minimum(min_ref[...], tile_min)
    max_ref[...] = jnp.maximum(max_ref[...], tile_max)


# -------------------- pass 3: SSIM(y_hat, y_f), gridded over B*C --------------------
def _ssim_kernel(cc_ref, left_ref, right_ref, img1_ref, img2_ref, psum_ref):
    C1 = cc_ref[0]
    C2 = cc_ref[1]
    a = img1_ref[0]            # (H, W)
    b = img2_ref[0]
    left = left_ref[...]       # (Ho, H)
    right = right_ref[...]     # (W, Wo)

    def gconv(x):
        # separable 11x11 Gaussian "valid" conv on the MXU: LEFT @ (x @ RIGHT)
        t = jnp.dot(x, right, preferred_element_type=jnp.float32)      # (H, Wo)
        return jnp.dot(left, t, preferred_element_type=jnp.float32)    # (Ho, Wo)

    # products hoisted out of the (former) tap loop
    mu1 = gconv(a)
    mu2 = gconv(b)
    s11 = gconv(a * a)
    s22 = gconv(b * b)
    s12 = gconv(a * b)

    mu1_sq = mu1 * mu1
    mu2_sq = mu2 * mu2
    mu1_mu2 = mu1 * mu2
    sigma1_sq = s11 - mu1_sq
    sigma2_sq = s22 - mu2_sq
    sigma12 = s12 - mu1_mu2

    v1 = 2.0 * sigma12 + C2
    v2 = sigma1_sq + sigma2_sq + C2
    num = (2.0 * mu1_mu2 + C1) * v1
    den = (mu1_sq + mu2_sq + C1) * v2
    ssim_map = num * pl.reciprocal(den, approx=True)

    psum_ref[...] = jnp.reshape(_sum_all_2d(ssim_map), (1, 1, 1))


# ------------------------------------- wrapper --------------------------------------
def mef_ssim_loss(y_1, y_2, y_f):
    """Returns (1 - MEF_SSIM score, y_hat), matching MEF_SSIM_Loss.forward."""
    assert y_1.ndim == 4
    B, C, H, W = y_1.shape
    assert H >= WINDOW_SIZE and W >= WINDOW_SIZE
    f32 = jnp.float32
    y1 = y_1.astype(f32)
    y2 = y_2.astype(f32)
    yf = y_f.astype(f32)

    # ---- lane-dense (rows, 128) view for the streaming passes (zero-padded tail) ----
    numel = B * C * H * W
    rows = -(-numel // LANE)
    tile_r = _MAX_TILE_ROWS if rows >= _MAX_TILE_ROWS else _round_up(rows, _SUBLANE)
    rows_p = _round_up(rows, tile_r)
    pad = rows_p * LANE - numel
    num_tiles = rows_p // tile_r

    def to_2d(x):
        flat = x.reshape(-1)
        if pad:
            flat = jnp.pad(flat, (0, pad))          # zeros: neutral for every moment,
        return flat.reshape(rows_p, LANE)           # min/max decision and y_hat slice

    y1_2d = to_2d(y1)
    y2_2d = to_2d(y2)

    smem = pl.BlockSpec(memory_space=pltpu.MemorySpace.SMEM)
    row_spec = pl.BlockSpec((tile_r, LANE), lambda i: (i, 0))
    acc_spec = pl.BlockSpec((1, 1), lambda i: (0, 0))       # resident accumulator
    scalar11 = jax.ShapeDtypeStruct((1, 1), f32)
    cparams_arb = pltpu.CompilerParams(
        dimension_semantics=("arbitrary",), vmem_limit_bytes=_VMEM_LIMIT)

    # ---------------- pass 1: global moments (one HBM sweep of y1, y2) ----------------
    d11, d22, d12, sd1, sd2, y11, y22 = pl.pallas_call(
        _stats_kernel,
        grid=(num_tiles,),
        in_specs=[row_spec, row_spec],
        out_specs=tuple([acc_spec] * 7),
        out_shape=tuple([scalar11] * 7),
        compiler_params=cparams_arb,
    )(y1_2d, y2_2d)

    S_d11 = d11[0, 0]
    S_d22 = d22[0, 0]
    S_d12 = d12[0, 0]
    S_d1 = sd1[0, 0]
    S_d2 = sd2[0, 0]
    Nf = jnp.float32(numel)

    # L2_NORM(b) = sqrt(sum((b + eps)^2)) expanded in the streamed moments.
    c_1 = jnp.sqrt(S_d11 + 2.0 * EPS * S_d1 + EPS * EPS * Nf)
    c_2 = jnp.sqrt(S_d22 + 2.0 * EPS * S_d2 + EPS * EPS * Nf)
    w_1 = jnp.sqrt(y11[0, 0])
    w_2 = jnp.sqrt(y22[0, 0])
    c_hat = jnp.maximum(c_1, c_2)

    p = w_1 / (c_1 * (w_1 + w_2))          # s_bar = p*d1 + q*d2
    q = w_2 / (c_2 * (w_1 + w_2))
    sbar_sq = (p * p * S_d11 + q * q * S_d22 + 2.0 * p * q * S_d12
               + 2.0 * EPS * (p * S_d1 + q * S_d2) + EPS * EPS * Nf)
    norm_sbar = jnp.sqrt(sbar_sq)
    g1 = c_hat * p / norm_sbar
    g2 = c_hat * q / norm_sbar

    # ------------------- pass 2: fused structure image + min / max --------------------
    coef = jnp.stack([g1, g2]).astype(f32)
    yhat_2d, yhat_min, yhat_max = pl.pallas_call(
        _yhat_kernel,
        grid=(num_tiles,),
        in_specs=[smem, row_spec, row_spec],
        out_specs=(row_spec, acc_spec, acc_spec),
        out_shape=(jax.ShapeDtypeStruct((rows_p, LANE), f32), scalar11, scalar11),
        compiler_params=cparams_arb,
    )(coef, y1_2d, y2_2d)
    y_hat = yhat_2d.reshape(-1)[:numel].reshape(B, C, H, W)

    # val_range=None branch of ssim(): dynamic range L from y_hat's min/max.
    max_val = jnp.where(yhat_max[0, 0] > 128.0, 255.0, 1.0)
    min_val = jnp.where(yhat_min[0, 0] < -0.5, -1.0, 0.0)
    L = max_val - min_val
    C1c = (0.01 * L) ** 2
    C2c = (0.03 * L) ** 2
    cc = jnp.stack([C1c, C2c]).astype(f32)

    # ------------------------------ pass 3: SSIM score --------------------------------
    BC = B * C
    Ho = H - WINDOW_SIZE + 1
    Wo = W - WINDOW_SIZE + 1
    left_np, right_np = _band_matrices(H, W)
    left = jnp.asarray(left_np)
    right = jnp.asarray(right_np)
    img1 = y_hat.reshape(BC, H, W)
    img2 = yf.reshape(BC, H, W)

    flops_per_ch = 5 * (2 * H * W * Wo + 2 * Ho * H * Wo) + 3 * H * W + 16 * Ho * Wo
    cost = pl.CostEstimate(
        flops=int(BC * flops_per_ch),
        transcendentals=int(BC * Ho * Wo),
        bytes_accessed=int(4 * (2 * BC * H * W + Ho * H + W * Wo + BC)),
    )

    psum = pl.pallas_call(
        _ssim_kernel,
        grid=(BC,),
        in_specs=[smem,
                  pl.BlockSpec((Ho, H), lambda b: (0, 0)),
                  pl.BlockSpec((W, Wo), lambda b: (0, 0)),
                  pl.BlockSpec((1, H, W), lambda b: (b, 0, 0)),
                  pl.BlockSpec((1, H, W), lambda b: (b, 0, 0))],
        out_specs=pl.BlockSpec((1, 1, 1), lambda b: (b, 0, 0)),
        out_shape=jax.ShapeDtypeStruct((BC, 1, 1), f32),
        compiler_params=pltpu.CompilerParams(
            dimension_semantics=("parallel",), vmem_limit_bytes=_VMEM_LIMIT),
        cost_estimate=cost,
    )(cc, left, right, img1, img2)

    score = jnp.sum(psum) / float(BC * Ho * Wo)
    loss = 1.0 - score
    return loss, y_hat


if __name__ == "__main__":
    key = jax.random.PRNGKey(0)
    k1, k2, k3 = jax.random.split(key, 3)
    B, C, H, W = 2, 1, 16, 16   # C=1 is the module default; H, W >= window_size (11)
    y_1 = jax.random.uniform(k1, (B, C, H, W), dtype=jnp.float32)
    y_2 = jax.random.uniform(k2, (B, C, H, W), dtype=jnp.float32)
    y_f = jax.random.uniform(k3, (B, C, H, W), dtype=jnp.float32)

    loss, y_hat = jax.jit(mef_ssim_loss)(y_1, y_2, y_f)
    jax.block_until_ready((loss, y_hat))
    assert y_hat.shape == (B, C, H, W)
    assert bool(jnp.isfinite(loss))
    print("KERNEL_OK")
</pallas_src>

<mosaic_0001>
module attributes {stable_mosaic.version = 11 : i64} {
  func.func @_stats_kernel(%arg0: i32, %arg1: memref<8x128xf32, #tpu.memory_space<vmem>>, %arg2: memref<8x128xf32, #tpu.memory_space<vmem>>, %arg3: memref<1x1xf32, #tpu.memory_space<vmem>>, %arg4: memref<1x1xf32, #tpu.memory_space<vmem>>, %arg5: memref<1x1xf32, #tpu.memory_space<vmem>>, %arg6: memref<1x1xf32, #tpu.memory_space<vmem>>, %arg7: memref<1x1xf32, #tpu.memory_space<vmem>>, %arg8: memref<1x1xf32, #tpu.memory_space<vmem>>, %arg9: memref<1x1xf32, #tpu.memory_space<vmem>>) attributes {dimension_semantics = [#tpu.dimension_semantics<arbitrary>], iteration_bounds = array<i64: 1>, scalar_prefetch = 0 : i64, scratch_operands = 0 : i64, tpu.core_type = #tpu.core_type<tc>, window_params = [{transform_indices = @transform_0, window_bounds = array<i64: 8, 128>}, {transform_indices = @transform_1, window_bounds = array<i64: 8, 128>}, {pipeline_mode = #tpu.pipeline_mode<synchronous>, transform_indices = @transform_2, window_bounds = array<i64: 1, 1>}, {pipeline_mode = #tpu.pipeline_mode<synchronous>, transform_indices = @transform_3, window_bounds = array<i64: 1, 1>}, {pipeline_mode = #tpu.pipeline_mode<synchronous>, transform_indices = @transform_4, window_bounds = array<i64: 1, 1>}, {pipeline_mode = #tpu.pipeline_mode<synchronous>, transform_indices = @transform_5, window_bounds = array<i64: 1, 1>}, {pipeline_mode = #tpu.pipeline_mode<synchronous>, transform_indices = @transform_6, window_bounds = array<i64: 1, 1>}, {pipeline_mode = #tpu.pipeline_mode<synchronous>, transform_indices = @transform_7, window_bounds = array<i64: 1, 1>}, {pipeline_mode = #tpu.pipeline_mode<synchronous>, transform_indices = @transform_8, window_bounds = array<i64: 1, 1>}]} {
    %c0_i32 = arith.constant 0 : i32
    %0 = arith.cmpi eq, %arg0, %c0_i32 : i32
    %1 = arith.extui %0 : i1 to i32
    %c0_i32_0 = arith.constant 0 : i32
    %2 = arith.cmpi ne, %1, %c0_i32_0 : i32
    scf.if %2 {
      %cst_46 = arith.constant 0.000000e+00 : f32
      %64 = vector.broadcast %cst_46 : f32 to vector<1x1xf32>
      %c0_47 = arith.constant 0 : index
      %c0_48 = arith.constant 0 : index
      %65 = vector.load %arg3[%c0_47, %c0_48] : memref<1x1xf32, #tpu.memory_space<vmem>>, vector<1x1xf32>
      tpu.vector_store %arg3[%c0_47, %c0_48], %64 {strides = array<i32>} : memref<1x1xf32, #tpu.memory_space<vmem>>, vector<1x1xf32>,
      %cst_49 = arith.constant 0.000000e+00 : f32
      %66 = vector.broadcast %cst_49 : f32 to vector<1x1xf32>
      %c0_50 = arith.constant 0 : index
      %c0_51 = arith.constant 0 : index
      %67 = vector.load %arg4[%c0_50, %c0_51] : memref<1x1xf32, #tpu.memory_space<vmem>>, vector<1x1xf32>
      tpu.vector_store %arg4[%c0_50, %c0_51], %66 {strides = array<i32>} : memref<1x1xf32, #tpu.memory_space<vmem>>, vector<1x1xf32>,
      %cst_52 = arith.constant 0.000000e+00 : f32
      %68 = vector.broadcast %cst_52 : f32 to vector<1x1xf32>
      %c0_53 = arith.constant 0 : index
      %c0_54 = arith.constant 0 : index
      %69 = vector.load %arg5[%c0_53, %c0_54] : memref<1x1xf32, #tpu.memory_space<vmem>>, vector<1x1xf32>
      tpu.vector_store %arg5[%c0_53, %c0_54], %68 {strides = array<i32>} : memref<1x1xf32, #tpu.memory_space<vmem>>, vector<1x1xf32>,
      %cst_55 = arith.constant 0.000000e+00 : f32
      %70 = vector.broadcast %cst_55 : f32 to vector<1x1xf32>
      %c0_56 = arith.constant 0 : index
      %c0_57 = arith.constant 0 : index
      %71 = vector.load %arg6[%c0_56, %c0_57] : memref<1x1xf32, #tpu.memory_space<vmem>>, vector<1x1xf32>
      tpu.vector_store %arg6[%c0_56, %c0_57], %70 {strides = array<i32>} : memref<1x1xf32, #tpu.memory_space<vmem>>, vector<1x1xf32>,
      %cst_58 = arith.constant 0.000000e+00 : f32
      %72 = vector.broadcast %cst_58 : f32 to vector<1x1xf32>
      %c0_59 = arith.constant 0 : index
      %c0_60 = arith.constant 0 : index
      %73 = vector.load %arg7[%c0_59, %c0_60] : memref<1x1xf32, #tpu.memory_space<vmem>>, vector<1x1xf32>
      tpu.vector_store %arg7[%c0_59, %c0_60], %72 {strides = array<i32>} : memref<1x1xf32, #tpu.memory_space<vmem>>, vector<1x1xf32>,
      %cst_61 = arith.constant 0.000000e+00 : f32
      %74 = vector.broadcast %cst_61 : f32 to vector<1x1xf32>
      %c0_62 = arith.constant 0 : index
      %c0_63 = arith.constant 0 : index
      %75 = vector.load %arg8[%c0_62, %c0_63] : memref<1x1xf32, #tpu.memory_space<vmem>>, vector<1x1xf32>
      tpu.vector_store %arg8[%c0_62, %c0_63], %74 {strides = array<i32>} : memref<1x1xf32, #tpu.memory_space<vmem>>, vector<1x1xf32>,
      %cst_64 = arith.constant 0.000000e+00 : f32
      %76 = vector.broadcast %cst_64 : f32 to vector<1x1xf32>
      %c0_65 = arith.constant 0 : index
      %c0_66 = arith.constant 0 : index
      %77 = vector.load %arg9[%c0_65, %c0_66] : memref<1x1xf32, #tpu.memory_space<vmem>>, vector<1x1xf32>
      tpu.vector_store %arg9[%c0_65, %c0_66], %76 {strides = array<i32>} : memref<1x1xf32, #tpu.memory_space<vmem>>, vector<1x1xf32>,
    } else {
    }
    %c0 = arith.constant 0 : index
    %c0_1 = arith.constant 0 : index
    %3 = vector.load %arg1[%c0, %c0_1] : memref<8x128xf32, #tpu.memory_space<vmem>>, vector<8x128xf32>
    %c0_2 = arith.constant 0 : index
    %c0_3 = arith.constant 0 : index
    %4 = vector.load %arg2[%c0_2, %c0_3] : memref<8x128xf32, #tpu.memory_space<vmem>>, vector<8x128xf32>
    %5 = arith.addf %3, %4 : vector<8x128xf32>
    %cst = arith.constant 5.000000e-01 : f32
    %6 = vector.broadcast %cst : f32 to vector<8x128xf32>
    %7 = arith.mulf %5, %6 : vector<8x128xf32>
    %8 = arith.subf %3, %7 : vector<8x128xf32>
    %9 = arith.subf %4, %7 : vector<8x128xf32>
    %c0_4 = arith.constant 0 : index
    %c0_5 = arith.constant 0 : index
    %10 = vector.load %arg3[%c0_4, %c0_5] : memref<1x1xf32, #tpu.memory_space<vmem>>, vector<1x1xf32>
    %11 = arith.mulf %8, %8 : vector<8x128xf32>
    %cst_6 = arith.constant dense<0.000000e+00> : vector<8xf32>
    %12 = vector.multi_reduction <add>, %11, %cst_6 [1] : vector<8x128xf32> to vector<8xf32>
    %13 = vector.shape_cast %12 : vector<8xf32> to vector<8x1xf32>
    %cst_7 = arith.constant dense<0.000000e+00> : vector<1xf32>
    %14 = vector.multi_reduction <add>, %13, %cst_7 [0] : vector<8x1xf32> to vector<1xf32>
    %15 = vector.shape_cast %14 : vector<1xf32> to vector<1x1xf32>
    %16 = arith.addf %10, %15 : vector<1x1xf32>
    %c0_8 = arith.constant 0 : index
    %c0_9 = arith.constant 0 : index
    %17 = vector.load %arg3[%c0_8, %c0_9] : memref<1x1xf32, #tpu.memory_space<vmem>>, vector<1x1xf32>
    tpu.vector_store %arg3[%c0_8, %c0_9], %16 {strides = array<i32>} : memref<1x1xf32, #tpu.memory_space<vmem>>, vector<1x1xf32>,
    %c0_10 = arith.constant 0 : index
    %c0_11 = arith.constant 0 : index
    %18 = vector.load %arg4[%c0_10, %c0_11] : memref<1x1xf32, #tpu.memory_space<vmem>>, vector<1x1xf32>
    %19 = arith.mulf %9, %9 : vector<8x128xf32>
    %cst_12 = arith.constant dense<0.000000e+00> : vector<8xf32>
    %20 = vector.multi_reduction <add>, %19, %cst_12 [1] : vector<8x128xf32> to vector<8xf32>
    %21 = vector.shape_cast %20 : vector<8xf32> to vector<8x1xf32>
    %cst_13 = arith.constant dense<0.000000e+00> : vector<1xf32>
    %22 = vector.multi_reduction <add>, %21, %cst_13 [0] : vector<8x1xf32> to vector<1xf32>
    %23 = vector.shape_cast %22 : vector<1xf32> to vector<1x1xf32>
    %24 = arith.addf %18, %23 : vector<1x1xf32>
    %c0_14 = arith.constant 0 : index
    %c0_15 = arith.constant 0 : index
    %25 = vector.load %arg4[%c0_14, %c0_15] : memref<1x1xf32, #tpu.memory_space<vmem>>, vector<1x1xf32>
    tpu.vector_store %arg4[%c0_14, %c0_15], %24 {strides = array<i32>} : memref<1x1xf32, #tpu.memory_space<vmem>>, vector<1x1xf32>,
    %c0_16 = arith.constant 0 : index
    %c0_17 = arith.constant 0 : index
    %26 = vector.load %arg5[%c0_16, %c0_17] : memref<1x1xf32, #tpu.memory_space<vmem>>, vector<1x1xf32>
    %27 = arith.mulf %8, %9 : vector<8x128xf32>
    %cst_18 = arith.constant dense<0.000000e+00> : vector<8xf32>
    %28 = vector.multi_reduction <add>, %27, %cst_18 [1] : vector<8x128xf32> to vector<8xf32>
    %29 = vector.shape_cast %28 : vector<8xf32> to vector<8x1xf32>
    %cst_19 = arith.constant dense<0.000000e+00> : vector<1xf32>
    %30 = vector.multi_reduction <add>, %29, %cst_19 [0] : vector<8x1xf32> to vector<1xf32>
    %31 = vector.shape_cast %30 : vector<1xf32> to vector<1x1xf32>
    %32 = arith.addf %26, %31 : vector<1x1xf32>
    %c0_20 = arith.constant 0 : index
    %c0_21 = arith.constant 0 : index
    %33 = vector.load %arg5[%c0_20, %c0_21] : memref<1x1xf32, #tpu.memory_space<vmem>>, vector<1x1xf32>
    tpu.vector_store %arg5[%c0_20, %c0_21], %32 {strides = array<i32>} : memref<1x1xf32, #tpu.memory_space<vmem>>, vector<1x1xf32>,
    %c0_22 = arith.constant 0 : index
    %c0_23 = arith.constant 0 : index
    %34 = vector.load %arg6[%c0_22, %c0_23] : memref<1x1xf32, #tpu.memory_space<vmem>>, vector<1x1xf32>
    %cst_24 = arith.constant dense<0.000000e+00> : vector<8xf32>
    %35 = vector.multi_reduction <add>, %8, %cst_24 [1] : vector<8x128xf32> to vector<8xf32>
    %36 = vector.shape_cast %35 : vector<8xf32> to vector<8x1xf32>
    %cst_25 = arith.constant dense<0.000000e+00> : vector<1xf32>
    %37 = vector.multi_reduction <add>, %36, %cst_25 [0] : vector<8x1xf32> to vector<1xf32>
    %38 = vector.shape_cast %37 : vector<1xf32> to vector<1x1xf32>
    %39 = arith.addf %34, %38 : vector<1x1xf32>
    %c0_26 = arith.constant 0 : index
    %c0_27 = arith.constant 0 : index
    %40 = vector.load %arg6[%c0_26, %c0_27] : memref<1x1xf32, #tpu.memory_space<vmem>>, vector<1x1xf32>
    tpu.vector_store %arg6[%c0_26, %c0_27], %39 {strides = array<i32>} : memref<1x1xf32, #tpu.memory_space<vmem>>, vector<1x1xf32>,
    %c0_28 = arith.constant 0 : index
    %c0_29 = arith.constant 0 : index
    %41 = vector.load %arg7[%c0_28, %c0_29] : memref<1x1xf32, #tpu.memory_space<vmem>>, vector<1x1xf32>
    %cst_30 = arith.constant dense<0.000000e+00> : vector<8xf32>
    %42 = vector.multi_reduction <add>, %9, %cst_30 [1] : vector<8x128xf32> to vector<8xf32>
    %43 = vector.shape_cast %42 : vector<8xf32> to vector<8x1xf32>
    %cst_31 = arith.constant dense<0.000000e+00> : vector<1xf32>
    %44 = vector.multi_reduction <add>, %43, %cst_31 [0] : vector<8x1xf32> to vector<1xf32>
    %45 = vector.shape_cast %44 : vector<1xf32> to vector<1x1xf32>
    %46 = arith.addf %41, %45 : vector<1x1xf32>
    %c0_32 = arith.constant 0 : index
    %c0_33 = arith.constant 0 : index
    %47 = vector.load %arg7[%c0_32, %c0_33] : memref<1x1xf32, #tpu.memory_space<vmem>>, vector<1x1xf32>
    tpu.vector_store %arg7[%c0_32, %c0_33], %46 {strides = array<i32>} : memref<1x1xf32, #tpu.memory_space<vmem>>, vector<1x1xf32>,
    %c0_34 = arith.constant 0 : index
    %c0_35 = arith.constant 0 : index
    %48 = vector.load %arg8[%c0_34, %c0_35] : memref<1x1xf32, #tpu.memory_space<vmem>>, vector<1x1xf32>
    %49 = arith.mulf %3, %3 : vector<8x128xf32>
    %cst_36 = arith.constant dense<0.000000e+00> : vector<8xf32>
    %50 = vector.multi_reduction <add>, %49, %cst_36 [1] : vector<8x128xf32> to vector<8xf32>
    %51 = vector.shape_cast %50 : vector<8xf32> to vector<8x1xf32>
    %cst_37 = arith.constant dense<0.000000e+00> : vector<1xf32>
    %52 = vector.multi_reduction <add>, %51, %cst_37 [0] : vector<8x1xf32> to vector<1xf32>
    %53 = vector.shape_cast %52 : vector<1xf32> to vector<1x1xf32>
    %54 = arith.addf %48, %53 : vector<1x1xf32>
    %c0_38 = arith.constant 0 : index
    %c0_39 = arith.constant 0 : index
    %55 = vector.load %arg8[%c0_38, %c0_39] : memref<1x1xf32, #tpu.memory_space<vmem>>, vector<1x1xf32>
    tpu.vector_store %arg8[%c0_38, %c0_39], %54 {strides = array<i32>} : memref<1x1xf32, #tpu.memory_space<vmem>>, vector<1x1xf32>,
    %c0_40 = arith.constant 0 : index
    %c0_41 = arith.constant 0 : index
    %56 = vector.load %arg9[%c0_40, %c0_41] : memref<1x1xf32, #tpu.memory_space<vmem>>, vector<1x1xf32>
    %57 = arith.mulf %4, %4 : vector<8x128xf32>
    %cst_42 = arith.constant dense<0.000000e+00> : vector<8xf32>
    %58 = vector.multi_reduction <add>, %57, %cst_42 [1] : vector<8x128xf32> to vector<8xf32>
    %59 = vector.shape_cast %58 : vector<8xf32> to vector<8x1xf32>
    %cst_43 = arith.constant dense<0.000000e+00> : vector<1xf32>
    %60 = vector.multi_reduction <add>, %59, %cst_43 [0] : vector<8x1xf32> to vector<1xf32>
    %61 = vector.shape_cast %60 : vector<1xf32> to vector<1x1xf32>
    %62 = arith.addf %56, %61 : vector<1x1xf32>
    %c0_44 = arith.constant 0 : index
    %c0_45 = arith.constant 0 : index
    %63 = vector.load %arg9[%c0_44, %c0_45] : memref<1x1xf32, #tpu.memory_space<vmem>>, vector<1x1xf32>
    tpu.vector_store %arg9[%c0_44, %c0_45], %62 {strides = array<i32>} : memref<1x1xf32, #tpu.memory_space<vmem>>, vector<1x1xf32>,
    return
  }
  func.func @transform_0(%arg0: i32) -> (i32, i32) {
    %c0_i32 = arith.constant 0 : i32
    %c0_i32_0 = arith.constant 0 : i32
    return %arg0, %c0_i32 : i32, i32
  }
  func.func @transform_1(%arg0: i32) -> (i32, i32) {
    %c0_i32 = arith.constant 0 : i32
    %c0_i32_0 = arith.constant 0 : i32
    return %arg0, %c0_i32 : i32, i32
  }
  func.func @transform_2(%arg0: i32) -> (i32, i32) {
    %c0_i32 = arith.constant 0 : i32
    %c0_i32_0 = arith.constant 0 : i32
    %c0_i32_1 = arith.constant 0 : i32
    return %c0_i32, %c0_i32_0 : i32, i32
  }
  func.func @transform_3(%arg0: i32) -> (i32, i32) {
    %c0_i32 = arith.constant 0 : i32
    %c0_i32_0 = arith.constant 0 : i32
    %c0_i32_1 = arith.constant 0 : i32
    return %c0_i32, %c0_i32_0 : i32, i32
  }
  func.func @transform_4(%arg0: i32) -> (i32, i32) {
    %c0_i32 = arith.constant 0 : i32
    %c0_i32_0 = arith.constant 0 : i32
    %c0_i32_1 = arith.constant 0 : i32
    return %c0_i32, %c0_i32_0 : i32, i32
  }
  func.func @transform_5(%arg0: i32) -> (i32, i32) {
    %c0_i32 = arith.constant 0 : i32
    %c0_i32_0 = arith.constant 0 : i32
    %c0_i32_1 = arith.constant 0 : i32
    return %c0_i32, %c0_i32_0 : i32, i32
  }
  func.func @transform_6(%arg0: i32) -> (i32, i32) {
    %c0_i32 = arith.constant 0 : i32
    %c0_i32_0 = arith.constant 0 : i32
    %c0_i32_1 = arith.constant 0 : i32
    return %c0_i32, %c0_i32_0 : i32, i32
  }
  func.func @transform_7(%arg0: i32) -> (i32, i32) {
    %c0_i32 = arith.constant 0 : i32
    %c0_i32_0 = arith.constant 0 : i32
    %c0_i32_1 = arith.constant 0 : i32
    return %c0_i32, %c0_i32_0 : i32, i32
  }
  func.func @transform_8(%arg0: i32) -> (i32, i32) {
    %c0_i32 = arith.constant 0 : i32
    %c0_i32_0 = arith.constant 0 : i32
    %c0_i32_1 = arith.constant 0 : i32
    return %c0_i32, %c0_i32_0 : i32, i32
  }
}

module attributes {stable_mosaic.version = 11 : i64} {
  func.func @_yhat_kernel(%arg0: i32, %arg1: memref<2xf32, #tpu.memory_space<smem>>, %arg2: memref<8x128xf32, #tpu.memory_space<vmem>>, %arg3: memref<8x128xf32, #tpu.memory_space<vmem>>, %arg4: memref<8x128xf32, #tpu.memory_space<vmem>>, %arg5: memref<1x1xf32, #tpu.memory_space<vmem>>, %arg6: memref<1x1xf32, #tpu.memory_space<vmem>>) attributes {dimension_semantics = [#tpu.dimension_semantics<arbitrary>], iteration_bounds = array<i64: 1>, scalar_prefetch = 0 : i64, scratch_operands = 0 : i64, tpu.core_type = #tpu.core_type<tc>, window_params = [{transform_indices = @transform_0, window_bounds = array<i64: 2>}, {transform_indices = @transform_1, window_bounds = array<i64: 8, 128>}, {transform_indices = @transform_2, window_bounds = array<i64: 8, 128>}, {transform_indices = @transform_3, window_bounds = array<i64: 8, 128>}, {pipeline_mode = #tpu.pipeline_mode<synchronous>, transform_indices = @transform_4, window_bounds = array<i64: 1, 1>}, {pipeline_mode = #tpu.pipeline_mode<synchronous>, transform_indices = @transform_5, window_bounds = array<i64: 1, 1>}]} {
    %c0 = arith.constant 0 : index
    %0 = memref.load %arg1[%c0] : memref<2xf32, #tpu.memory_space<smem>>
    %c1 = arith.constant 1 : index
    %1 = memref.load %arg1[%c1] : memref<2xf32, #tpu.memory_space<smem>>
    %c0_0 = arith.constant 0 : index
    %c0_1 = arith.constant 0 : index
    %2 = vector.load %arg2[%c0_0, %c0_1] : memref<8x128xf32, #tpu.memory_space<vmem>>, vector<8x128xf32>
    %c0_2 = arith.constant 0 : index
    %c0_3 = arith.constant 0 : index
    %3 = vector.load %arg3[%c0_2, %c0_3] : memref<8x128xf32, #tpu.memory_space<vmem>>, vector<8x128xf32>
    %4 = arith.addf %2, %3 : vector<8x128xf32>
    %cst = arith.constant 5.000000e-01 : f32
    %5 = vector.broadcast %cst : f32 to vector<8x128xf32>
    %6 = arith.mulf %4, %5 : vector<8x128xf32>
    %7 = arith.subf %2, %6 : vector<8x128xf32>
    %8 = vector.broadcast %0 : f32 to vector<8x128xf32>
    %9 = arith.mulf %8, %7 : vector<8x128xf32>
    %10 = arith.subf %3, %6 : vector<8x128xf32>
    %11 = vector.broadcast %1 : f32 to vector<8x128xf32>
    %12 = arith.mulf %11, %10 : vector<8x128xf32>
    %13 = arith.addf %9, %12 : vector<8x128xf32>
    %14 = arith.addf %3, %6 : vector<8x128xf32>
    %cst_4 = arith.constant 5.000000e-01 : f32
    %15 = vector.broadcast %cst_4 : f32 to vector<8x128xf32>
    %16 = arith.mulf %14, %15 : vector<8x128xf32>
    %17 = arith.addf %13, %16 : vector<8x128xf32>
    %c0_5 = arith.constant 0 : index
    %c0_6 = arith.constant 0 : index
    %18 = vector.load %arg4[%c0_5, %c0_6] : memref<8x128xf32, #tpu.memory_space<vmem>>, vector<8x128xf32>
    tpu.vector_store %arg4[%c0_5, %c0_6], %17 {strides = array<i32>} : memref<8x128xf32, #tpu.memory_space<vmem>>, vector<8x128xf32>,
    %cst_7 = arith.constant dense<0x7F800000> : vector<8xf32>
    %19 = vector.multi_reduction <minimumf>, %17, %cst_7 [1] : vector<8x128xf32> to vector<8xf32>
    %20 = vector.shape_cast %19 : vector<8xf32> to vector<8x1xf32>
    %cst_8 = arith.constant dense<0x7F800000> : vector<1xf32>
    %21 = vector.multi_reduction <minimumf>, %20, %cst_8 [0] : vector<8x1xf32> to vector<1xf32>
    %22 = vector.shape_cast %21 : vector<1xf32> to vector<1x1xf32>
    %cst_9 = arith.constant dense<0xFF800000> : vector<8xf32>
    %23 = vector.multi_reduction <maximumf>, %17, %cst_9 [1] : vector<8x128xf32> to vector<8xf32>
    %24 = vector.shape_cast %23 : vector<8xf32> to vector<8x1xf32>
    %cst_10 = arith.constant dense<0xFF800000> : vector<1xf32>
    %25 = vector.multi_reduction <maximumf>, %24, %cst_10 [0] : vector<8x1xf32> to vector<1xf32>
    %26 = vector.shape_cast %25 : vector<1xf32> to vector<1x1xf32>
    %c0_i32 = arith.constant 0 : i32
    %27 = arith.cmpi eq, %arg0, %c0_i32 : i32
    %28 = arith.extui %27 : i1 to i32
    %c0_i32_11 = arith.constant 0 : i32
    %29 = arith.cmpi ne, %28, %c0_i32_11 : i32
    scf.if %29 {
      %cst_20 = arith.constant 0x7F800000 : f32
      %36 = vector.broadcast %cst_20 : f32 to vector<1x1xf32>
      %c0_21 = arith.constant 0 : index
      %c0_22 = arith.constant 0 : index
      %37 = vector.load %arg5[%c0_21, %c0_22] : memref<1x1xf32, #tpu.memory_space<vmem>>, vector<1x1xf32>
      tpu.vector_store %arg5[%c0_21, %c0_22], %36 {strides = array<i32>} : memref<1x1xf32, #tpu.memory_space<vmem>>, vector<1x1xf32>,
      %cst_23 = arith.constant 0xFF800000 : f32
      %38 = vector.broadcast %cst_23 : f32 to vector<1x1xf32>
      %c0_24 = arith.constant 0 : index
      %c0_25 = arith.constant 0 : index
      %39 = vector.load %arg6[%c0_24, %c0_25] : memref<1x1xf32, #tpu.memory_space<vmem>>, vector<1x1xf32>
      tpu.vector_store %arg6[%c0_24, %c0_25], %38 {strides = array<i32>} : memref<1x1xf32, #tpu.memory_space<vmem>>, vector<1x1xf32>,
    } else {
    }
    %c0_12 = arith.constant 0 : index
    %c0_13 = arith.constant 0 : index
    %30 = vector.load %arg5[%c0_12, %c0_13] : memref<1x1xf32, #tpu.memory_space<vmem>>, vector<1x1xf32>
    %31 = arith.minimumf %30, %22 : vector<1x1xf32>
    %c0_14 = arith.constant 0 : index
    %c0_15 = arith.constant 0 : index
    %32 = vector.load %arg5[%c0_14, %c0_15] : memref<1x1xf32, #tpu.memory_space<vmem>>, vector<1x1xf32>
    tpu.vector_store %arg5[%c0_14, %c0_15], %31 {strides = array<i32>} : memref<1x1xf32, #tpu.memory_space<vmem>>, vector<1x1xf32>,
    %c0_16 = arith.constant 0 : index
    %c0_17 = arith.constant 0 : index
    %33 = vector.load %arg6[%c0_16, %c0_17] : memref<1x1xf32, #tpu.memory_space<vmem>>, vector<1x1xf32>
    %34 = arith.maximumf %33, %26 : vector<1x1xf32>
    %c0_18 = arith.constant 0 : index
    %c0_19 = arith.constant 0 : index
    %35 = vector.load %arg6[%c0_18, %c0_19] : memref<1x1xf32, #tpu.memory_space<vmem>>, vector<1x1xf32>
    tpu.vector_store %arg6[%c0_18, %c0_19], %34 {strides = array<i32>} : memref<1x1xf32, #tpu.memory_space<vmem>>, vector<1x1xf32>,
    return
  }
  func.func @transform_0(%arg0: i32) -> i32 {
    %c0_i32 = arith.constant 0 : i32
    %c0_i32_0 = arith.constant 0 : i32
    return %c0_i32 : i32
  }
  func.func @transform_1(%arg0: i32) -> (i32, i32) {
    %c0_i32 = arith.constant 0 : i32
    %c0_i32_0 = arith.constant 0 : i32
    return %arg0, %c0_i32 : i32, i32
  }
  func.func @transform_2(%arg0: i32) -> (i32, i32) {
    %c0_i32 = arith.constant 0 : i32
    %c0_i32_0 = arith.constant 0 : i32
    return %arg0, %c0_i32 : i32, i32
  }
  func.func @transform_3(%arg0: i32) -> (i32, i32) {
    %c0_i32 = arith.constant 0 : i32
    %c0_i32_0 = arith.constant 0 : i32
    return %arg0, %c0_i32 : i32, i32
  }
  func.func @transform_4(%arg0: i32) -> (i32, i32) {
    %c0_i32 = arith.constant 0 : i32
    %c0_i32_0 = arith.constant 0 : i32
    %c0_i32_1 = arith.constant 0 : i32
    return %c0_i32, %c0_i32_0 : i32, i32
  }
  func.func @transform_5(%arg0: i32) -> (i32, i32) {
    %c0_i32 = arith.constant 0 : i32
    %c0_i32_0 = arith.constant 0 : i32
    %c0_i32_1 = arith.constant 0 : i32
    return %c0_i32, %c0_i32_0 : i32, i32
  }
}

module attributes {stable_mosaic.version = 11 : i64} {
  func.func @_ssim_kernel(%arg0: i32, %arg1: memref<2xf32, #tpu.memory_space<smem>>, %arg2: memref<6x16xf32, #tpu.memory_space<vmem>>, %arg3: memref<16x6xf32, #tpu.memory_space<vmem>>, %arg4: memref<1x16x16xf32, #tpu.memory_space<vmem>>, %arg5: memref<1x16x16xf32, #tpu.memory_space<vmem>>, %arg6: memref<1x1x1xf32, #tpu.memory_space<vmem>>) attributes {dimension_semantics = [#tpu.dimension_semantics<parallel>], iteration_bounds = array<i64: 2>, scalar_prefetch = 0 : i64, scratch_operands = 0 : i64, tpu.core_type = #tpu.core_type<tc>, window_params = [{transform_indices = @transform_0, window_bounds = array<i64: 2>}, {pipeline_mode = #tpu.pipeline_mode<synchronous>, transform_indices = @transform_1, window_bounds = array<i64: 6, 16>}, {pipeline_mode = #tpu.pipeline_mode<synchronous>, transform_indices = @transform_2, window_bounds = array<i64: 16, 6>}, {transform_indices = @transform_3, window_bounds = array<i64: 1, 16, 16>}, {transform_indices = @transform_4, window_bounds = array<i64: 1, 16, 16>}, {transform_indices = @transform_5, window_bounds = array<i64: 1, 1, 1>}]} {
    %c0 = arith.constant 0 : index
    %0 = memref.load %arg1[%c0] : memref<2xf32, #tpu.memory_space<smem>>
    %c1 = arith.constant 1 : index
    %1 = memref.load %arg1[%c1] : memref<2xf32, #tpu.memory_space<smem>>
    %c0_0 = arith.constant 0 : index
    %c0_1 = arith.constant 0 : index
    %c0_2 = arith.constant 0 : index
    %2 = vector.load %arg4[%c0_0, %c0_1, %c0_2] : memref<1x16x16xf32, #tpu.memory_space<vmem>>, vector<1x16x16xf32>
    %3 = vector.shape_cast %2 : vector<1x16x16xf32> to vector<16x16xf32>
    %c0_3 = arith.constant 0 : index
    %c0_4 = arith.constant 0 : index
    %c0_5 = arith.constant 0 : index
    %4 = vector.load %arg5[%c0_3, %c0_4, %c0_5] : memref<1x16x16xf32, #tpu.memory_space<vmem>>, vector<1x16x16xf32>
    %5 = vector.shape_cast %4 : vector<1x16x16xf32> to vector<16x16xf32>
    %c0_6 = arith.constant 0 : index
    %c0_7 = arith.constant 0 : index
    %6 = vector.load %arg2[%c0_6, %c0_7] : memref<6x16xf32, #tpu.memory_space<vmem>>, vector<6x16xf32>
    %c0_8 = arith.constant 0 : index
    %c0_9 = arith.constant 0 : index
    %7 = vector.load %arg3[%c0_8, %c0_9] : memref<16x6xf32, #tpu.memory_space<vmem>>, vector<16x6xf32>
    %cst = arith.constant dense<0.000000e+00> : vector<16x6xf32>
    %8 = tpu.matmul %3, %7, %cst {dimension_numbers = #tpu.dot_dimension_numbers<[1], [0], [0], [1], [0, 0, 1, 1], [], []>} : vector<16x16xf32>, vector<16x6xf32>, vector<16x6xf32> -> vector<16x6xf32>
    %cst_10 = arith.constant dense<0.000000e+00> : vector<6x6xf32>
    %9 = tpu.matmul %6, %8, %cst_10 {dimension_numbers = #tpu.dot_dimension_numbers<[1], [0], [0], [1], [0, 0, 1, 1], [], []>} : vector<6x16xf32>, vector<16x6xf32>, vector<6x6xf32> -> vector<6x6xf32>
    %cst_11 = arith.constant dense<0.000000e+00> : vector<16x6xf32>
    %10 = tpu.matmul %5, %7, %cst_11 {dimension_numbers = #tpu.dot_dimension_numbers<[1], [0], [0], [1], [0, 0, 1, 1], [], []>} : vector<16x16xf32>, vector<16x6xf32>, vector<16x6xf32> -> vector<16x6xf32>
    %cst_12 = arith.constant dense<0.000000e+00> : vector<6x6xf32>
    %11 = tpu.matmul %6, %10, %cst_12 {dimension_numbers = #tpu.dot_dimension_numbers<[1], [0], [0], [1], [0, 0, 1, 1], [], []>} : vector<6x16xf32>, vector<16x6xf32>, vector<6x6xf32> -> vector<6x6xf32>
    %12 = arith.mulf %3, %3 : vector<16x16xf32>
    %cst_13 = arith.constant dense<0.000000e+00> : vector<16x6xf32>
    %13 = tpu.matmul %12, %7, %cst_13 {dimension_numbers = #tpu.dot_dimension_numbers<[1], [0], [0], [1], [0, 0, 1, 1], [], []>} : vector<16x16xf32>, vector<16x6xf32>, vector<16x6xf32> -> vector<16x6xf32>
    %cst_14 = arith.constant dense<0.000000e+00> : vector<6x6xf32>
    %14 = tpu.matmul %6, %13, %cst_14 {dimension_numbers = #tpu.dot_dimension_numbers<[1], [0], [0], [1], [0, 0, 1, 1], [], []>} : vector<6x16xf32>, vector<16x6xf32>, vector<6x6xf32> -> vector<6x6xf32>
    %15 = arith.mulf %5, %5 : vector<16x16xf32>
    %cst_15 = arith.constant dense<0.000000e+00> : vector<16x6xf32>
    %16 = tpu.matmul %15, %7, %cst_15 {dimension_numbers = #tpu.dot_dimension_numbers<[1], [0], [0], [1], [0, 0, 1, 1], [], []>} : vector<16x16xf32>, vector<16x6xf32>, vector<16x6xf32> -> vector<16x6xf32>
    %cst_16 = arith.constant dense<0.000000e+00> : vector<6x6xf32>
    %17 = tpu.matmul %6, %16, %cst_16 {dimension_numbers = #tpu.dot_dimension_numbers<[1], [0], [0], [1], [0, 0, 1, 1], [], []>} : vector<6x16xf32>, vector<16x6xf32>, vector<6x6xf32> -> vector<6x6xf32>
    %18 = arith.mulf %3, %5 : vector<16x16xf32>
    %cst_17 = arith.constant dense<0.000000e+00> : vector<16x6xf32>
    %19 = tpu.matmul %18, %7, %cst_17 {dimension_numbers = #tpu.dot_dimension_numbers<[1], [0], [0], [1], [0, 0, 1, 1], [], []>} : vector<16x16xf32>, vector<16x6xf32>, vector<16x6xf32> -> vector<16x6xf32>
    %cst_18 = arith.constant dense<0.000000e+00> : vector<6x6xf32>
    %20 = tpu.matmul %6, %19, %cst_18 {dimension_numbers = #tpu.dot_dimension_numbers<[1], [0], [0], [1], [0, 0, 1, 1], [], []>} : vector<6x16xf32>, vector<16x6xf32>, vector<6x6xf32> -> vector<6x6xf32>
    %21 = arith.mulf %9, %9 : vector<6x6xf32>
    %22 = arith.mulf %11, %11 : vector<6x6xf32>
    %23 = arith.mulf %9, %11 : vector<6x6xf32>
    %24 = arith.subf %14, %21 : vector<6x6xf32>
    %25 = arith.subf %17, %22 : vector<6x6xf32>
    %26 = arith.subf %20, %23 : vector<6x6xf32>
    %cst_19 = arith.constant 2.000000e+00 : f32
    %27 = vector.broadcast %cst_19 : f32 to vector<6x6xf32>
    %28 = arith.mulf %27, %26 : vector<6x6xf32>
    %29 = vector.broadcast %1 : f32 to vector<6x6xf32>
    %30 = arith.addf %28, %29 : vector<6x6xf32>
    %31 = arith.addf %24, %25 : vector<6x6xf32>
    %32 = vector.broadcast %1 : f32 to vector<6x6xf32>
    %33 = arith.addf %31, %32 : vector<6x6xf32>
    %cst_20 = arith.constant 2.000000e+00 : f32
    %34 = vector.broadcast %cst_20 : f32 to vector<6x6xf32>
    %35 = arith.mulf %34, %23 : vector<6x6xf32>
    %36 = vector.broadcast %0 : f32 to vector<6x6xf32>
    %37 = arith.addf %35, %36 : vector<6x6xf32>
    %38 = arith.mulf %37, %30 : vector<6x6xf32>
    %39 = arith.addf %21, %22 : vector<6x6xf32>
    %40 = vector.broadcast %0 : f32 to vector<6x6xf32>
    %41 = arith.addf %39, %40 : vector<6x6xf32>
    %42 = arith.mulf %41, %33 : vector<6x6xf32>
    %43 = tpu.reciprocal %42 {approx = true} : vector<6x6xf32> -> vector<6x6xf32>
    %44 = arith.mulf %38, %43 : vector<6x6xf32>
    %cst_21 = arith.constant dense<0.000000e+00> : vector<6xf32>
    %45 = vector.multi_reduction <add>, %44, %cst_21 [1] : vector<6x6xf32> to vector<6xf32>
    %46 = vector.shape_cast %45 : vector<6xf32> to vector<6x1xf32>
    %cst_22 = arith.constant dense<0.000000e+00> : vector<1xf32>
    %47 = vector.multi_reduction <add>, %46, %cst_22 [0] : vector<6x1xf32> to vector<1xf32>
    %48 = vector.shape_cast %47 : vector<1xf32> to vector<1x1xf32>
    %49 = vector.shape_cast %48 : vector<1x1xf32> to vector<1x1x1xf32>
    %c0_23 = arith.constant 0 : index
    %c0_24 = arith.constant 0 : index
    %c0_25 = arith.constant 0 : index
    %50 = vector.load %arg6[%c0_23, %c0_24, %c0_25] : memref<1x1x1xf32, #tpu.memory_space<vmem>>, vector<1x1x1xf32>
    tpu.vector_store %arg6[%c0_23, %c0_24, %c0_25], %49 {strides = array<i32>} : memref<1x1x1xf32, #tpu.memory_space<vmem>>, vector<1x1x1xf32>,
    return
  }
  func.func @transform_0(%arg0: i32) -> i32 {
    %c0_i32 = arith.constant 0 : i32
    %c0_i32_0 = arith.constant 0 : i32
    return %c0_i32 : i32
  }
  func.func @transform_1(%arg0: i32) -> (i32, i32) {
    %c0_i32 = arith.constant 0 : i32
    %c0_i32_0 = arith.constant 0 : i32
    %c0_i32_1 = arith.constant 0 : i32
    return %c0_i32, %c0_i32_0 : i32, i32
  }
  func.func @transform_2(%arg0: i32) -> (i32, i32) {
    %c0_i32 = arith.constant 0 : i32
    %c0_i32_0 = arith.constant 0 : i32
    %c0_i32_1 = arith.constant 0 : i32
    return %c0_i32, %c0_i32_0 : i32, i32
  }
  func.func @transform_3(%arg0: i32) -> (i32, i32, i32) {
    %c0_i32 = arith.constant 0 : i32
    %c0_i32_0 = arith.constant 0 : i32
    %c0_i32_1 = arith.constant 0 : i32
    return %arg0, %c0_i32, %c0_i32_0 : i32, i32, i32
  }
  func.func @transform_4(%arg0: i32) -> (i32, i32, i32) {
    %c0_i32 = arith.constant 0 : i32
    %c0_i32_0 = arith.constant 0 : i32
    %c0_i32_1 = arith.constant 0 : i32
    return %arg0, %c0_i32, %c0_i32_0 : i32, i32, i32
  }
  func.func @transform_5(%arg0: i32) -> (i32, i32, i32) {
    %c0_i32 = arith.constant 0 : i32
    %c0_i32_0 = arith.constant 0 : i32
    %c0_i32_1 = arith.constant 0 : i32
    return %arg0, %c0_i32, %c0_i32_0 : i32, i32, i32
  }
}

</mosaic_0001>

<bundles_post_ra>
// kernel: mef_ssim_loss.3
= control target key start
LH: loop header
LB: loop body
LE: loop exit
PB: predicated region body
PF: predicated region fallthrough
CT: control target
= control target key end

     0   :  { %14 = vsyncpa [#allocation3], 0  ;;  %s608_s0 = inlined_call_operand.vmem [shape: f32[8,128], index: 0, kind: input, shape index: {}]   ;;  %s609_s1 = inlined_call_operand.vmem [shape: f32[8,128], index: 1, kind: input, shape index: {}]   ;;  %s610_s2 = inlined_call_operand.hbm [shape: f32[1,1], index: 2, kind: output, shape index: {0}]   ;;  %s611_s3 = inlined_call_operand.hbm [shape: f32[1,1], index: 3, kind: output, shape index: {1}]   ;;  %s612_s4 = inlined_call_operand.hbm [shape: f32[1,1], index: 4, kind: output, shape index: {2}]   ;;  %s613_s5 = inlined_call_operand.hbm [shape: f32[1,1], index: 5, kind: output, shape index: {3}]   ;;  %s614_s6 = inlined_call_operand.hbm [shape: f32[1,1], index: 6, kind: output, shape index: {4}]   ;;  %s615_s7 = inlined_call_operand.hbm [shape: f32[1,1], index: 7, kind: output, shape index: {5}]   ;;  %s616_s8 = inlined_call_operand.hbm [shape: f32[1,1], index: 8, kind: output, shape index: {6}]  }
   0x1   :  { %15 = vsyncpa [#allocation5], 0 }
   0x2   :  { %16 = vsyncpa [#allocation8], 0  ;;  %v34_v0 = vld [vmem:[%s608_s0] sm:$0xff] }
   0x3   :  { %v35_v1 = vld [vmem:[%s609_s1] sm:$0xff] }
   0x4   :  { %17 = vsyncpa [#allocation11], 0  ;;  %v100_v2 = vmul.f32 %v34_v0, %v34_v0  ;;  %v36_v3 = vadd.f32 %v35_v1, %v34_v0  ;;  %v112_v10 = vmul.f32 %v35_v1, %v35_v1  ;;  %vm26_vm0 = vcmask 0   ;;  %s389_s0 = smov [#allocation10]   ;;  %s390_s9 = smov [#allocation4]  }
   0x5   :  { %v388_v11 = vmov 0.0   ;;  %s179_s1 = sshll.u32 %s389_s0, 4  ;;  %s454_s10 = sshll.u32 %s390_s9, 4  ;;  %s456_s1 = int_to_ptr.vmem [resolvable:$true] %s179_s1  ;;  %s482_s10 = int_to_ptr.vmem [resolvable:$true] %s454_s10 }
   0x6   :  { %101 = vadd.xlane.f32.xlu1 %v100_v2  ;;  %v37_v4 = vmul.f32 0.5, %v36_v3  ;;  %28 = vst.msk [vmem:[#allocation4] sm:$0x1] %vm26_vm0, %v388_v11  ;;  %27 = vst.msk [vmem:[#allocation2] sm:$0x1] %vm26_vm0, %v388_v11  ;;  %s391_s11 = smov [#allocation7]   ;;  %p231_p1 = scmp.lt.s32.totalorder %s456_s1, %s456_s1 }
   0x7   :  { %29 = vst.msk [vmem:[#allocation6] sm:$0x1] %vm26_vm0, %v388_v11  ;;  %30 = vst.msk [vmem:[#allocation7] sm:$0x1] %vm26_vm0, %v388_v11  ;;  %s159_s12 = sshll.u32 %s391_s11, 4  ;;  %s392_s13 = smov [#allocation2]   ;;  %s479_s12 = int_to_ptr.vmem [resolvable:$true] %s159_s12 }
   0x8   :  { %v38_v5 = vsub.f32 %v34_v0, %v37_v4  ;;  %v39_v6 = vsub.f32 %v35_v1, %v37_v4  ;;  %31 = vst.msk [vmem:[#allocation9] sm:$0x1] %vm26_vm0, %v388_v11  ;;  %32 = vst.msk [vmem:[#allocation10] sm:$0x1] %vm26_vm0, %v388_v11  ;;  %s458_s14 = sshll.u32 %s392_s13, 4  ;;  %s226_s15 = scalar_lea.vmem %s456_s1, 16  ;;  %s485_s14 = int_to_ptr.vmem [resolvable:$true] %s458_s14 }
   0x9   :  { %33 = vst.msk [vmem:[#allocation12] sm:$0x1] %vm26_vm0, %v388_v11  ;;  %p227_p0 = scmp.ne.s32.totalorder %s456_s1, %s226_s15  ;;  %s230_s16 = scalar_lea.vmem %s456_s1, 32 }
   0xa   :  { %78 = vadd.xlane.f32.xlu0 %v38_v5  ;;  %v41_v7 = vmul.f32 %v38_v5, %v38_v5  ;;  %v54_v8 = vmul.f32 %v39_v6, %v39_v6  ;;  %v66_v9 = vmul.f32 %v39_v6, %v38_v5  ;;  %p232_p2 = scmp.lt.s32.totalorder %s230_s16, %s226_s15 }
   0xc   :  { %42 = vadd.xlane.f32.xlu1 %v41_v7  ;;  %p233_p3 = por %p232_p2, %p231_p1 }
   0xd   :  { %v40_v48 = vld [vmem:[#allocation2] sm:$0x1] }
   0xe   :  { %55 = vadd.xlane.f32.xlu0 %v54_v8  ;;  %v77_v45 = vld [vmem:[#allocation7] sm:$0x1]  ;;  %p234_p4 = pnand %p233_p3, %p227_p0 }
   0xf   :  { %v99_v32 = vld [vmem:[#allocation10] sm:$0x1] }
  0x10   :  { %89 = vadd.xlane.f32.xlu1 %v39_v6 }
  0x12   :  { %67 = vadd.xlane.f32.xlu0 %v66_v9 }
  0x16   :  { %113 = vadd.xlane.f32.xlu0 %v112_v10 }
  0x93   :  { %v102_v12 = vpop.xlane.xlu1 %101 }
  0x94   :  { %v103_v13 = vrot.slane %v102_v12, 4 }
  0x96   :  { %v104_v14 = vadd.f32 %v103_v13, %v102_v12 }
  0x97   :  { %v79_v15 = vpop.xlane.xlu0 %78 }
  0x98   :  { %v105_v16 = vrot.slane %v104_v14, 2  ;;  %v80_v17 = vrot.slane %v79_v15, 4 }
  0x99   :  { %v43_v18 = vpop.xlane.xlu1 %42 }
  0x9a   :  { %v106_v19 = vadd.f32 %v105_v16, %v104_v14  ;;  %v81_v20 = vadd.f32 %v80_v17, %v79_v15  ;;  %v44_v21 = vrot.slane %v43_v18, 4 }
  0x9b   :  { %v56_v22 = vpop.xlane.xlu0 %55 }
  0x9c   :  { %v107_v23 = vrot.slane %v106_v19, 1  ;;  %v82_v24 = vrot.slane %v81_v20, 2  ;;  %v45_v25 = vadd.f32 %v44_v21, %v43_v18  ;;  %v57_v26 = vrot.slane %v56_v22, 4 }
  0x9d   :  { %v90_v27 = vpop.xlane.xlu1 %89 }
  0x9e   :  { %v108_v28 = vadd.f32 %v107_v23, %v106_v19  ;;  %v83_v29 = vadd.f32 %v82_v24, %v81_v20  ;;  %v46_v30 = vrot.slane %v45_v25, 2  ;;  %v58_v31 = vadd.f32 %v57_v26, %v56_v22 }
  0x9f   :  { %v91_v33 = vrot.slane %v90_v27, 4  ;;  %v68_v34 = vpop.xlane.xlu0 %67 }
  0xa0   :  { %v84_v35 = vrot.slane %v83_v29, 1  ;;  %v47_v36 = vadd.f32 %v46_v30, %v45_v25  ;;  %v59_v37 = vrot.slane %v58_v31, 2  ;;  %v69_v38 = vrot.slane %v68_v34, 4 }
  0xa1   :  { %v92_v39 = vadd.f32 %v91_v33, %v90_v27  ;;  %v109_v40 = vadd.f32 %v108_v28, %v99_v32 }
  0xa2   :  { %v85_v41 = vadd.f32 %v84_v35, %v83_v29  ;;  %v48_v42 = vrot.slane %v47_v36, 1  ;;  %v60_v43 = vadd.f32 %v59_v37, %v58_v31  ;;  %v70_v44 = vadd.f32 %v69_v38, %v68_v34 }
  0xa3   :  { %v93_v46 = vrot.slane %v92_v39, 2  ;;  %v114_v47 = vpop.xlane.xlu0 %113  ;;  %110 = vst.msk [vmem:[#allocation10] sm:$0x1] %vm26_vm0, %v109_v40 }
  0xa4   :  { %v49_v49 = vadd.f32 %v48_v42, %v47_v36  ;;  %v61_v50 = vrot.slane %v60_v43, 1  ;;  %v71_v51 = vrot.slane %v70_v44, 2  ;;  %v115_v52 = vrot.slane %v114_v47, 4 }
  0xa5   :  { %237 = shalt.err (!%p234_p4)
}
  0xa6   :  { %s238_s19 = scalar_lea.hbm %s615_s7, 16 }
  0xa7   :  { %p239_p5 = scmp.ne.s32.totalorder %s615_s7, %s238_s19  ;;  %p242_p6 = scmp.lt.u32.totalorder %s238_s19, %s615_s7 }
  0xa9   :  { %p244_p7 = pnand %p242_p6, %p239_p5 }
  0xab   :  { %247 = shalt.err (!%p244_p7)
}
  0xac   :  { %182 = dma.vmem_to_hbm [thread:$0]  %s456_s1, 16, %s615_s7, [#allocation11]   ;;  %v94_v53 = vadd.f32 %v93_v46, %v92_v39  ;;  %v53_v54 = vld [vmem:[#allocation4] sm:$0x1]  ;;  %v86_v55 = vadd.f32 %v85_v41, %v77_v45  ;;  %v62_v56 = vadd.f32 %v61_v50, %v60_v43  ;;  %v72_v57 = vadd.f32 %v71_v51, %v70_v44 }
  0xad   :  { %v116_v58 = vadd.f32 %v115_v52, %v114_v47  ;;  %v50_v59 = vadd.f32 %v49_v49, %v40_v48  ;;  %s393_s7 = smov [#allocation6]   ;;  %s394_s27 = smov [#allocation9]  }
  0xae   :  { %v95_v60 = vrot.slane %v94_v53, 1  ;;  %87 = vst.msk [vmem:[#allocation7] sm:$0x1] %vm26_vm0, %v86_v55  ;;  %s488_s26 = sshll.u32 %s393_s7, 4  ;;  %s490_s28 = sshll.u32 %s394_s27, 4  ;;  %v73_v61 = vrot.slane %v72_v57, 1  ;;  %v63_v63 = vadd.f32 %v62_v56, %v53_v54  ;;  %s531_s28 = int_to_ptr.vmem [resolvable:$true] %s490_s28  ;;  %s552_s26 = int_to_ptr.vmem [resolvable:$true] %s488_s26 }
  0xaf   :  { %v117_v62 = vrot.slane %v116_v58, 2  ;;  %s248_s29 = scalar_lea.vmem %s479_s12, 16  ;;  %s252_s30 = scalar_lea.vmem %s479_s12, 32 }
  0xb0   :  { %p249_p8 = scmp.ne.s32.totalorder %s479_s12, %s248_s29  ;;  %p253_p9 = scmp.lt.s32.totalorder %s479_s12, %s479_s12 }
  0xb1   :  { %p254_p10 = scmp.lt.s32.totalorder %s252_s30, %s248_s29 }
  0xb3   :  { %p255_p11 = por %p254_p10, %p253_p9 }
  0xb5   :  { %p256_p12 = pnand %p255_p11, %p249_p8 }
  0xb7   :  { %259 = shalt.err (!%p256_p12)
}
  0xb8   :  { %s260_s9 = scalar_lea.hbm %s613_s5, 16 }
  0xb9   :  { %p261_p13 = scmp.ne.s32.totalorder %s613_s5, %s260_s9  ;;  %p264_p0 = scmp.lt.u32.totalorder %s260_s9, %s613_s5 }
  0xbb   :  { %p266_p1 = pnand %p264_p0, %p261_p13 }
  0xbd   :  { %269 = shalt.err (!%p266_p1)
}
  0xbe   :  { %162 = dma.vmem_to_hbm [thread:$0]  %s479_s12, 16, %s613_s5, [#allocation8]   ;;  %52 = vst.msk [vmem:[#allocation2] sm:$0x1] %vm26_vm0, %v50_v59  ;;  %v88_v0 = vld [vmem:[#allocation9] sm:$0x1]  ;;  %v96_v1 = vadd.f32 %v95_v60, %v94_v53 }
  0xbf   :  { %s270_s19 = scalar_lea.vmem %s485_s14, 16  ;;  %s274_s20 = scalar_lea.vmem %s485_s14, 32 }
  0xc0   :  { %p271_p2 = scmp.ne.s32.totalorder %s485_s14, %s270_s19  ;;  %p275_p3 = scmp.lt.s32.totalorder %s485_s14, %s485_s14 }
  0xc1   :  { %p276_p4 = scmp.lt.s32.totalorder %s274_s20, %s270_s19 }
  0xc3   :  { %p277_p5 = por %p276_p4, %p275_p3 }
  0xc5   :  { %p278_p6 = pnand %p277_p5, %p271_p2 }
  0xc7   :  { %281 = shalt.err (!%p278_p6)
}
  0xc8   :  { %s282_s23 = scalar_lea.hbm %s610_s2, 16 }
  0xc9   :  { %p283_p7 = scmp.ne.s32.totalorder %s610_s2, %s282_s23  ;;  %p286_p8 = scmp.lt.u32.totalorder %s282_s23, %s610_s2 }
  0xcb   :  { %p288_p9 = pnand %p286_p8, %p283_p7 }
  0xcd   :  { %291 = shalt.err (!%p288_p9)
}
  0xce   :  { %132 = dma.vmem_to_hbm [thread:$0]  %s485_s14, 16, %s610_s2, [#allocation3]   ;;  %v65_v2 = vld [vmem:[#allocation6] sm:$0x1]  ;;  %v74_v3 = vadd.f32 %v73_v61, %v72_v57  ;;  %v118_v4 = vadd.f32 %v117_v62, %v116_v58  ;;  %64 = vst.msk [vmem:[#allocation4] sm:$0x1] %vm26_vm0, %v63_v63 }
  0xcf   :  { %s292_s29 = scalar_lea.vmem %s482_s10, 16  ;;  %s296_s30 = scalar_lea.vmem %s482_s10, 32 }
  0xd0   :  { %p293_p10 = scmp.ne.s32.totalorder %s482_s10, %s292_s29  ;;  %p297_p11 = scmp.lt.s32.totalorder %s482_s10, %s482_s10 }
  0xd1   :  { %p298_p12 = scmp.lt.s32.totalorder %s296_s30, %s292_s29 }
  0xd3   :  { %p299_p13 = por %p298_p12, %p297_p11 }
  0xd5   :  { %p300_p0 = pnand %p299_p13, %p293_p10 }
  0xd7   :  { %303 = shalt.err (!%p300_p0)
}
  0xd8   :  { %s304_s2 = scalar_lea.hbm %s611_s3, 16 }
  0xd9   :  { %p305_p1 = scmp.ne.s32.totalorder %s611_s3, %s304_s2  ;;  %p308_p2 = scmp.lt.u32.totalorder %s304_s2, %s611_s3 }
  0xdb   :  { %p310_p3 = pnand %p308_p2, %p305_p1 }
  0xdd   :  { %313 = shalt.err (!%p310_p3)
}
  0xde   :  { %142 = dma.vmem_to_hbm [thread:$0]  %s482_s10, 16, %s611_s3, [#allocation5]   ;;  %v97_v5 = vadd.f32 %v96_v1, %v88_v0  ;;  %v119_v6 = vrot.slane %v118_v4, 1  ;;  %v75_v7 = vadd.f32 %v74_v3, %v65_v2  ;;  %v111_v8 = vld [vmem:[#allocation12] sm:$0x1] }
  0xdf   :  { %s395_s17 = smov [#allocation12]   ;;  %s314_s19 = scalar_lea.vmem %s531_s28, 16 }
  0xe0   :  { %98 = vst.msk [vmem:[#allocation9] sm:$0x1] %vm26_vm0, %v97_v5  ;;  %s555_s18 = sshll.u32 %s395_s17, 4  ;;  %v120_v9 = vadd.f32 %v119_v6, %v118_v4  ;;  %76 = vst.msk [vmem:[#allocation6] sm:$0x1] %vm26_vm0, %v75_v7  ;;  %p315_p4 = scmp.ne.s32.totalorder %s531_s28, %s314_s19  ;;  %s190_s18 = int_to_ptr.vmem [resolvable:$true] %s555_s18 }
  0xe1   :  { %s318_s20 = scalar_lea.vmem %s531_s28, 32  ;;  %p319_p5 = scmp.lt.s32.totalorder %s531_s28, %s531_s28 }
  0xe2   :  { %p320_p6 = scmp.lt.s32.totalorder %s318_s20, %s314_s19 }
  0xe4   :  { %p321_p7 = por %p320_p6, %p319_p5 }
  0xe6   :  { %p322_p8 = pnand %p321_p7, %p315_p4 }
  0xe8   :  { %325 = shalt.err (!%p322_p8)
}
  0xe9   :  { %s326_s21 = scalar_lea.hbm %s614_s6, 16 }
  0xea   :  { %p327_p9 = scmp.ne.s32.totalorder %s614_s6, %s326_s21  ;;  %p330_p10 = scmp.lt.u32.totalorder %s326_s21, %s614_s6 }
  0xec   :  { %p332_p11 = pnand %p330_p10, %p327_p9 }
  0xee   :  { %335 = shalt.err (!%p332_p11)
}
  0xef   :  { %172 = dma.vmem_to_hbm [thread:$0]  %s531_s28, 16, %s614_s6, [#allocation8]  }
  0xf0   :  { %s336_s7 = scalar_lea.vmem %s552_s26, 16  ;;  %s340_s27 = scalar_lea.vmem %s552_s26, 32 }
  0xf1   :  { %p337_p12 = scmp.ne.s32.totalorder %s552_s26, %s336_s7  ;;  %p341_p13 = scmp.lt.s32.totalorder %s552_s26, %s552_s26 }
  0xf2   :  { %p342_p0 = scmp.lt.s32.totalorder %s340_s27, %s336_s7 }
  0xf4   :  { %p343_p1 = por %p342_p0, %p341_p13 }
  0xf6   :  { %p344_p2 = pnand %p343_p1, %p337_p12 }
  0xf8   :  { %347 = shalt.err (!%p344_p2)
}
  0xf9   :  { %s348_s0 = scalar_lea.hbm %s612_s4, 16 }
  0xfa   :  { %p349_p3 = scmp.ne.s32.totalorder %s612_s4, %s348_s0  ;;  %p352_p4 = scmp.lt.u32.totalorder %s348_s0, %s612_s4 }
  0xfc   :  { %p354_p5 = pnand %p352_p4, %p349_p3 }
  0xfe   :  { %357 = shalt.err (!%p354_p5)
}
  0xff   :  { %152 = dma.vmem_to_hbm [thread:$0]  %s552_s26, 16, %s612_s4, [#allocation5]   ;;  %v121_v10 = vadd.f32 %v120_v9, %v111_v8 }
 0x100   :  { %s358_s11 = scalar_lea.vmem %s190_s18, 16  ;;  %s362_s13 = scalar_lea.vmem %s190_s18, 32 }
 0x101   :  { %122 = vst.msk [vmem:[#allocation12] sm:$0x1] %vm26_vm0, %v121_v10  ;;  %p359_p6 = scmp.ne.s32.totalorder %s190_s18, %s358_s11  ;;  %p363_p7 = scmp.lt.s32.totalorder %s190_s18, %s190_s18 }
 0x102   :  { %p364_p8 = scmp.lt.s32.totalorder %s362_s13, %s358_s11 }
 0x104   :  { %p365_p9 = por %p364_p8, %p363_p7 }
 0x106   :  { %p366_p10 = pnand %p365_p9, %p359_p6 }
 0x108   :  { %369 = shalt.err (!%p366_p10)
}
 0x109   :  { %s370_s17 = scalar_lea.hbm %s616_s8, 16 }
 0x10a   :  { %p371_p11 = scmp.ne.s32.totalorder %s616_s8, %s370_s17  ;;  %p374_p12 = scmp.lt.u32.totalorder %s370_s17, %s616_s8 }
 0x10c   :  { %p376_p13 = pnand %p374_p12, %p371_p11 }
 0x10e   :  { %379 = shalt.err (!%p376_p13)
}
 0x10f   :  { %192 = dma.vmem_to_hbm [thread:$0]  %s190_s18, 16, %s616_s8, [#allocation11]  }
 0x110   :  { %380 = dma.done.wait [#allocation3], 16  }
 0x111   :  { %381 = vsyncadd [#allocation3], 4294967280 }
 0x112   :  { %382 = dma.done.wait [#allocation5], 32  }
 0x113   :  { %383 = vsyncadd [#allocation5], 4294967264 }
 0x114   :  { %384 = dma.done.wait [#allocation8], 32  }
 0x115   :  { %385 = vsyncadd [#allocation8], 4294967264 }
 0x116   :  { %386 = dma.done.wait [#allocation11], 32  }
 0x117   :  { %387 = vsyncadd [#allocation11], 4294967264 }
 0x118   :  { %214 = vsyncpa [#allocation3], 1 }
 0x119   :  { %215 = vsyncpa [#allocation5], 1 }
 0x11a   :  { %216 = vsyncpa [#allocation8], 1 }
 0x11b   :  { %217 = vsyncpa [#allocation11], 1 }

// kernel: mef_ssim_loss.4
= control target key start
LH: loop header
LB: loop body
LE: loop exit
PB: predicated region body
PF: predicated region fallthrough
CT: control target
= control target key end

     0   :  { %11 = vsyncpa [#allocation4], 0  ;;  %s255_s0 = inlined_call_operand.vmem [shape: f32[2], index: 0, kind: input, shape index: {}]   ;;  %s256_s1 = inlined_call_operand.vmem [shape: f32[8,128], index: 1, kind: input, shape index: {}]   ;;  %s257_s2 = inlined_call_operand.vmem [shape: f32[8,128], index: 2, kind: input, shape index: {}]   ;;  %s258_s3 = inlined_call_operand.vmem [shape: f32[8,128], index: 3, kind: output, shape index: {0}]   ;;  %s259_s4 = inlined_call_operand.hbm [shape: f32[1,1], index: 4, kind: output, shape index: {1}]   ;;  %s260_s5 = inlined_call_operand.hbm [shape: f32[1,1], index: 5, kind: output, shape index: {2}]  }
   0x1   :  { %12 = vsyncpa [#allocation3], 0 }
   0x2   :  { %13 = vsyncpa [#allocation7], 0  ;;  %s20_s20 = sshll.u32 %s255_s0, 4  ;;  %s21_s20 = int_to_ptr.vmem [resolvable:$true] %s20_s20 }
   0x3   :  { %s118_s21 = scalar_lea.vmem %s21_s20, 16  ;;  %p123_p1 = scmp.lt.s32.totalorder %s21_s20, %s21_s20 }
   0x4   :  { %p119_p0 = scmp.ne.s32.totalorder %s21_s20, %s118_s21  ;;  %p124_p2 = scmp.lt.s32.totalorder %s118_s21, %s118_s21 }
   0x6   :  { %p125_p3 = por %p124_p2, %p123_p1 }
   0x8   :  { %p126_p4 = pnand %p125_p3, %p119_p0 }
   0xa   :  { %129 = shalt.err (!%p126_p4)
}
   0xb   :  { %s180_s22 = smov [#allocation2]  }
   0xc   :  { %23 = dma.vmem_to_smem %s21_s20, 16, %s180_s22, [#allocation4]  }
   0xd   :  { %174 = dma.done.wait [#allocation4], 16  }
   0xe   :  { %175 = vsyncadd [#allocation4], 4294967280 }
   0xf   :  { %31 = sfence }
  0x10   :  { %s32_s23 = sld [smem:[#allocation2]]  ;;  %s112_s24 = sld [smem:[#allocation2 + $0x1]]  ;;  %v34_v0 = vld [vmem:[%s256_s1] sm:$0xff]  ;;  %vm69_vm0 = vcmask 0   ;;  %v181_v14 = vmov inf   ;;  %v182_v15 = vmov -inf  }
  0x11   :  { %v35_v1 = vld [vmem:[%s257_s2] sm:$0xff]  ;;  %70 = vst.msk [vmem:[#allocation5] sm:$0x1] %vm69_vm0, %v181_v14  ;;  %71 = vst.msk [vmem:[#allocation6] sm:$0x1] %vm69_vm0, %v182_v15  ;;  %s183_s1 = smov [#allocation5]  }
  0x12   :  { %v36_v2 = vadd.f32 %v35_v1, %v34_v0  ;;  %s87_s2 = sshll.u32 %s183_s1, 4  ;;  %s88_s2 = int_to_ptr.vmem [resolvable:$true] %s87_s2 }
  0x13   :  { %s130_s6 = scalar_lea.vmem %s88_s2, 16  ;;  %s134_s7 = scalar_lea.vmem %s88_s2, 32 }
  0x14   :  { %v37_v3 = vmul.f32 0.5, %v36_v2  ;;  %p131_p5 = scmp.ne.s32.totalorder %s88_s2, %s130_s6  ;;  %p135_p6 = scmp.lt.s32.totalorder %s88_s2, %s88_s2 }
  0x15   :  { %p136_p7 = scmp.lt.s32.totalorder %s134_s7, %s130_s6 }
  0x16   :  { %v38_v4 = vsub.f32 %v34_v0, %v37_v3  ;;  %v41_v5 = vsub.f32 %v35_v1, %v37_v3  ;;  %v45_v6 = vadd.f32 %v37_v3, %v35_v1  ;;  %v39_v7 = vstv %s32_s23 }
  0x17   :  { %v42_v8 = vstv %s112_s24  ;;  %p137_p8 = por %p136_p7, %p135_p6 }
  0x18   :  { %v40_v9 = vmul.f32 %v39_v7, %v38_v4  ;;  %v43_v10 = vmul.f32 %v42_v8, %v41_v5  ;;  %v46_v11 = vmul.f32 0.5, %v45_v6  ;;  %v72_v26 = vld [vmem:[#allocation5] sm:$0x1]  ;;  %v76_v31 = vld [vmem:[#allocation6] sm:$0x1] }
  0x19   :  { %p138_p9 = pnand %p137_p8, %p131_p5 }
  0x1a   :  { %v44_v12 = vadd.f32 %v43_v10, %v40_v9 }
  0x1c   :  { %v47_v13 = vadd.f32 %v46_v11, %v44_v12 }
  0x1e   :  { %49 = vmin.xlane.f32.xlu0 %v47_v13  ;;  %48 = vst [vmem:[%s258_s3] sm:$0xff] %v47_v13  ;;  %s184_s3 = smov [#allocation6]  }
  0x1f   :  { %s97_s30 = sshll.u32 %s184_s3, 4  ;;  %s98_s30 = int_to_ptr.vmem [resolvable:$true] %s97_s30 }
  0x22   :  { %57 = vmax.xlane.f32.xlu0 %v47_v13 }
  0xab   :  { %v50_v16 = vpop.xlane.xlu0 %49 }
  0xac   :  { %v51_v17 = vrot.slane %v50_v16, 4 }
  0xae   :  { %v52_v18 = vmin.f32 %v50_v16, %v51_v17 }
  0xaf   :  { %v58_v19 = vpop.xlane.xlu0 %57 }
  0xb0   :  { %v53_v20 = vrot.slane %v52_v18, 2  ;;  %v59_v21 = vrot.slane %v58_v19, 4 }
  0xb2   :  { %v54_v22 = vmin.f32 %v52_v18, %v53_v20  ;;  %v60_v23 = vmax.f32 %v58_v19, %v59_v21 }
  0xb4   :  { %v55_v24 = vrot.slane %v54_v22, 1  ;;  %v61_v25 = vrot.slane %v60_v23, 2 }
  0xb6   :  { %v56_v27 = vmin.f32 %v54_v22, %v55_v24  ;;  %v62_v28 = vmax.f32 %v60_v23, %v61_v25 }
  0xb8   :  { %v63_v29 = vrot.slane %v62_v28, 1  ;;  %v73_v30 = vmin.f32 %v72_v26, %v56_v27 }
  0xba   :  { %v64_v32 = vmax.f32 %v62_v28, %v63_v29  ;;  %75 = vst.msk [vmem:[#allocation5] sm:$0x1] %vm69_vm0, %v73_v30 }
  0xbb   :  { %141 = shalt.err (!%p138_p9)
}
  0xbc   :  { %s142_s10 = scalar_lea.hbm %s259_s4, 16 }
  0xbd   :  { %p143_p10 = scmp.ne.s32.totalorder %s259_s4, %s142_s10  ;;  %p146_p11 = scmp.lt.u32.totalorder %s142_s10, %s259_s4 }
  0xbf   :  { %p148_p12 = pnand %p146_p11, %p143_p10 }
  0xc1   :  { %151 = shalt.err (!%p148_p12)
}
  0xc2   :  { %90 = dma.vmem_to_hbm [thread:$0]  %s88_s2, 16, %s259_s4, [#allocation3]   ;;  %v77_v33 = vmax.f32 %v76_v31, %v64_v32 }
  0xc3   :  { %s152_s17 = scalar_lea.vmem %s98_s30, 16  ;;  %s156_s18 = scalar_lea.vmem %s98_s30, 32 }
  0xc4   :  { %78 = vst.msk [vmem:[#allocation6] sm:$0x1] %vm69_vm0, %v77_v33  ;;  %p153_p13 = scmp.ne.s32.totalorder %s98_s30, %s152_s17  ;;  %p157_p0 = scmp.lt.s32.totalorder %s98_s30, %s98_s30 }
  0xc5   :  { %p158_p1 = scmp.lt.s32.totalorder %s156_s18, %s152_s17 }
  0xc7   :  { %p159_p2 = por %p158_p1, %p157_p0 }
  0xc9   :  { %p160_p3 = pnand %p159_p2, %p153_p13 }
  0xcb   :  { %163 = shalt.err (!%p160_p3)
}
  0xcc   :  { %s164_s21 = scalar_lea.hbm %s260_s5, 16 }
  0xcd   :  { %p165_p4 = scmp.ne.s32.totalorder %s260_s5, %s164_s21  ;;  %p168_p5 = scmp.lt.u32.totalorder %s164_s21, %s260_s5 }
  0xcf   :  { %p170_p6 = pnand %p168_p5, %p165_p4 }
  0xd1   :  { %173 = shalt.err (!%p170_p6)
}
  0xd2   :  { %100 = dma.vmem_to_hbm [thread:$0]  %s98_s30, 16, %s260_s5, [#allocation7]  }
  0xd3   :  { %176 = dma.done.wait [#allocation3], 16  }
  0xd4   :  { %177 = vsyncadd [#allocation3], 4294967280 }
  0xd5   :  { %178 = dma.done.wait [#allocation7], 16  }
  0xd6   :  { %179 = vsyncadd [#allocation7], 4294967280 }
  0xd7   :  { %109 = vsyncpa [#allocation3], 1 }
  0xd8   :  { %110 = vsyncpa [#allocation7], 1 }
  0xd9   :  { %111 = vsyncpa [#allocation4], 1 }

// kernel: mef_ssim_loss.5
= control target key start
LH: loop header
LB: loop body
LE: loop exit
PB: predicated region body
PF: predicated region fallthrough
CT: control target
= control target key end

     0   :  { %10 = vsyncpa [#allocation3], 0  ;;  %s1390_s18 = smov 0   ;;  %s1457_s0 = inlined_call_operand.vmem [shape: f32[2], index: 0, kind: input, shape index: {}]   ;;  %s1458_s1 = inlined_call_operand.vmem [shape: f32[6,16], index: 1, kind: input, shape index: {}]   ;;  %s1459_s2 = inlined_call_operand.vmem [shape: f32[16,6], index: 2, kind: input, shape index: {}]   ;;  %s1460_s3 = inlined_call_operand.vmem [shape: f32[2,16,16], index: 3, kind: input, shape index: {}]   ;;  %s1461_s4 = inlined_call_operand.vmem [shape: f32[2,16,16], index: 4, kind: input, shape index: {}]   ;;  %s1462_s5 = inlined_call_operand.vmem [shape: f32[2,1,1], index: 5, kind: output, shape index: {}]  }
   0x1 LB: > { %s1134_s19 = sadd.s32 4294967295, %s1354_s18   ;;  %p1136_p0 = scmp.ge.s32.totalorder %s1354_s18, 1  ;;  %s1354_s18 = sphi %s1390_s18, %s16_s18  }
   0x2   : > { %p162_p1 = scmp.lt.s32.totalorder %s1354_s18, 3  ;;  %s175_s22 = sshll.u32 %s1457_s0, 4  ;;  %s176_s22 = int_to_ptr.vmem [resolvable:$true] %s175_s22 }
   0x3   : > { %p1313_p3 = scmp.eq.s32.totalorder %s1134_s19, 0  ;;  %s1329_s24 = scalar_lea.vmem %s176_s22, 16 }
   0x4   : > { %p1401_p2 = pnand %p1136_p0, %p162_p1  ;;  %p1330_p6 = scmp.ne.s32.totalorder %s176_s22, %s1329_s24 }
   0x5   : > { %p1337_p10 = scmp.lt.s32.totalorder %s176_s22, %s176_s22  ;;  %p1338_p11 = scmp.lt.s32.totalorder %s1329_s24, %s1329_s24 }
   0x6   : > { %p1309_p4 = pneg %p1401_p2 }
   0x7   : > { %p1339_p12 = por %p1338_p11, %p1337_p10 }
   0x8   : > { %p1310_p5 = pnand %p1313_p3, %p1309_p4 }
   0xa   : > { %p1331_p7 = pneg %p1310_p5 }
   0xc   : > { %p1332_p8 = pnand %p1331_p7, %p1330_p6 }
   0xe   : > { %p1333_p9 = pneg %p1332_p8 }
  0x10   : > { %p1340_p13 = pnand %p1339_p12, %p1333_p9 }
  0x12   : > { %1343 = shalt.err (!%p1340_p13)
}
  0x13   : > { %s1356_s25 = smov [#allocation2]   ;;  %210 = sbr.rel (%p1401_p2) target bundleno = 656 (0x290), region = 40 }
  0x14   : > { %1312 = dma.vmem_to_smem (!%p1310_p5), %s176_s22, 16, %s1356_s25, [#allocation3]  }
  0x1a   : > { %1349 = dma.done.wait (%p1313_p3), [#allocation3], 16  }
  0x1b   : > { %1351 = vsyncadd (%p1313_p3), [#allocation3], 4294967280 }
  0x1c   : > { %216 = sfence }
  0x1d   : > { %v262_v0 = vld [vmem:[%s1459_s2] sm:$0xff]  ;;  %v263_v1 = vld [vmem:[%s1459_s2 + $0x8] sm:$0xff]  ;;  %p242_p0 = scmp.lt.s32.totalorder %s1134_s19, 1  ;;  %vm264_vm0 = vcmask 130048   ;;  %v1357_v13 = vmov 0.0|0.0   ;;  %vm1358_vm1 = vmmov 0  }
  0x1e   : > { %v1270_v2 = vpack.c.bf16 %v263_v1, %v262_v0  ;;  %1274 = vmatprep.subr.bf16.mxu1 %v1357_v13  ;;  %v1359_v14 = vmov 0.0   ;;  %v261_v19 = vld [vmem:[%s1458_s1] sm:$0x3f]  ;;  %s255_s14 = sld [smem:[#allocation2]]  ;;  %s1145_s15 = sld [smem:[#allocation2 + $0x1]]  ;;  %vm1049_vm2 = vcmask 46080  }
  0x1f   : > { %s1465_s19 = smov (!%p242_p0, %s1134_s19), 1  ;;  %1211 = vmatprep.mubr.msk.f32.mxu1 %vm1358_vm1, %v1359_v14  ;;  %vm1053_vm3 = vcmask 1045504   ;;  %vm1061_vm4 = vcmask 0  }
  0x20   : > { %1271 = vmatprep.subr.bf16.mxu0 %v1270_v2  ;;  %s1163_s30 = sshll.u32 %s1465_s19, 4  ;;  %s254_s20 = scalar_lea.vmem %s1462_s5, %s1465_s19 }
  0x21   : > { %1273 = vmatpush3.bf16.msra.mxu0 %v1270_v2  ;;  %s246_s8 = scalar_lea.vmem %s1460_s3, %s1163_s30  ;;  %s251_s11 = scalar_lea.vmem %s1461_s4, %s1163_s30 }
  0x22   : > { %1278 = vmatprep.subr.bf16.mxu0 %v1270_v2  ;;  %v257_v3 = vld [vmem:[%s246_s8] sm:$0xff]  ;;  %v258_v4 = vld [vmem:[%s246_s8 + $0x8] sm:$0xff] }
  0x23   : > { %v259_v5 = vld [vmem:[%s251_s11] sm:$0xff]  ;;  %1204 = vmatprep.mubr.msk.f32.mxu0 %vm264_vm0, %v257_v3  ;;  %v570_v6 = vmul.f32 %v257_v3, %v257_v3  ;;  %v260_v7 = vld [vmem:[%s251_s11 + $0x8] sm:$0xff]  ;;  %v571_v8 = vmul.f32 %v258_v4, %v258_v4 }
  0x24   : > { %1205 = vmatmul.mubr.msk.f32.vlgmr.msra.gmra.mrb[0].mxu0 %vm264_vm0, %v258_v4  ;;  %v723_v9 = vmul.f32 %v259_v5, %v259_v5  ;;  %v724_v10 = vmul.f32 %v260_v7, %v260_v7  ;;  %v876_v11 = vmul.f32 %v259_v5, %v257_v3  ;;  %v877_v12 = vmul.f32 %v260_v7, %v258_v4 }
  0x25   : > { %1280 = vmatpush3.bf16.msra.mxu0 %v1270_v2  ;;  %1218 = vmatprep.mubr.msk.f32.mxu0 %vm264_vm0, %v259_v5  ;;  %v1041_v45 = vstv %s255_s14  ;;  %v1036_v46 = vstv %s1145_s15 }
  0x26   : > { %1285 = vmatprep.subr.bf16.mxu0 %v1270_v2 }
  0x28   : > { %1219 = vmatmul.mubr.msk.f32.vlgmr.msra.gmra.mrb[2].mxu0 %vm264_vm0, %v260_v7 }
  0x29   : > { %1287 = vmatpush3.bf16.msra.mxu0 %v1270_v2  ;;  %1232 = vmatprep.mubr.msk.f32.mxu0 %vm264_vm0, %v570_v6 }
  0x2a   : > { %1292 = vmatprep.subr.bf16.mxu0 %v1270_v2 }
  0x2c   : > { %1233 = vmatmul.mubr.msk.f32.vlgmr.msra.gmra.mrb[4].mxu0 %vm264_vm0, %v571_v8 }
  0x2d   : > { %1294 = vmatpush3.bf16.msra.mxu0 %v1270_v2  ;;  %1246 = vmatprep.mubr.msk.f32.mxu0 %vm264_vm0, %v723_v9 }
  0x2e   : > { %1299 = vmatprep.subr.bf16.mxu0 %v1270_v2 }
  0x30   : > { %1247 = vmatmul.mubr.msk.f32.vlgmr.msra.gmra.mrb[6].mxu0 %vm264_vm0, %v724_v10 }
  0x31   : > { %1301 = vmatpush3.bf16.msra.mxu0 %v1270_v2  ;;  %1260 = vmatprep.mubr.msk.f32.mxu0 %vm264_vm0, %v876_v11 }
  0x34   : > { %1261 = vmatmul.mubr.msk.f32.vlgmr.msra.gmra.mrb[8].mxu0 %vm264_vm0, %v877_v12 }
  0xf7   : > { %v1206_v15 = vpop.f32.mrb[0].mxu0 }
  0xf8   : > { %v337_v16 = vpop.f32.mrb[1].mxu0 }
  0xf9   : > { %v1275_v17 = vpack.c.bf16 %v1206_v15, %v337_v16 }
  0xfb   : > { %1276 = vmatpush3.bf16.msra.mxu1 %v1275_v17  ;;  %v1220_v18 = vpop.f32.mrb[2].mxu0 }
  0xfc   : > { %v491_v20 = vpop.f32.mrb[3].mxu0  ;;  %1281 = vmatprep.subr.bf16.mxu1 %v1357_v13 }
  0xfd   : > { %v1282_v21 = vpack.c.bf16 %v1220_v18, %v491_v20 }
  0xfe   : > { %1212 = vmatmul.mubr.msk.f32.vlgmr.msra.gmra.mrb[0].mxu1 %vm264_vm0, %v261_v19 }
  0xff   : > { %1283 = vmatpush3.bf16.msra.mxu1 %v1282_v21  ;;  %v1234_v22 = vpop.f32.mrb[4].mxu0  ;;  %1225 = vmatprep.mubr.msk.f32.mxu1 %vm1358_vm1, %v1359_v14 }
 0x100   : > { %v644_v23 = vpop.f32.mrb[5].mxu0  ;;  %1288 = vmatprep.subr.bf16.mxu1 %v1357_v13 }
 0x101   : > { %v1289_v24 = vpack.c.bf16 %v1234_v22, %v644_v23 }
 0x102   : > { %1226 = vmatmul.mubr.msk.f32.vlgmr.msra.gmra.mrb[2].mxu1 %vm264_vm0, %v261_v19 }
 0x103   : > { %1290 = vmatpush3.bf16.msra.mxu1 %v1289_v24  ;;  %v1248_v25 = vpop.f32.mrb[6].mxu0  ;;  %1239 = vmatprep.mubr.msk.f32.mxu1 %vm1358_vm1, %v1359_v14 }
 0x104   : > { %v797_v26 = vpop.f32.mrb[7].mxu0  ;;  %1295 = vmatprep.subr.bf16.mxu1 %v1357_v13 }
 0x105   : > { %v1296_v27 = vpack.c.bf16 %v1248_v25, %v797_v26 }
 0x106   : > { %1240 = vmatmul.mubr.msk.f32.vlgmr.msra.gmra.mrb[4].mxu1 %vm264_vm0, %v261_v19 }
 0x107   : > { %1297 = vmatpush3.bf16.msra.mxu1 %v1296_v27  ;;  %v1262_v28 = vpop.f32.mrb[8].mxu0  ;;  %1253 = vmatprep.mubr.msk.f32.mxu1 %vm1358_vm1, %v1359_v14 }
 0x108   : > { %v950_v29 = vpop.f32.mrb[9].mxu0  ;;  %1302 = vmatprep.subr.bf16.mxu1 %v1357_v13 }
 0x109   : > { %v1303_v30 = vpack.c.bf16 %v1262_v28, %v950_v29 }
 0x10a   : > { %1254 = vmatmul.mubr.msk.f32.vlgmr.msra.gmra.mrb[6].mxu1 %vm264_vm0, %v261_v19 }
 0x10b   : > { %1304 = vmatpush3.bf16.msra.mxu1 %v1303_v30  ;;  %1267 = vmatprep.mubr.msk.f32.mxu1 %vm1358_vm1, %v1359_v14 }
 0x10e   : > { %1268 = vmatmul.mubr.msk.f32.vlgmr.msra.gmra.mrb[8].mxu1 %vm264_vm0, %v261_v19 }
 0x1d1   : > { %v415_v31 = vpop.f32.mrb[0].mxu1 }
 0x1d2   : > { %v1213_v32 = vpop.f32.mrb[1].mxu1  ;;  %v1029_v34 = vmul.f32 %v415_v31, %v415_v31 }
 0x1d5   : > { %v566_v33 = vpop.f32.mrb[2].mxu1 }
 0x1d6   : > { %v1030_v35 = vmul.f32 %v566_v33, %v566_v33  ;;  %v1031_v36 = vmul.f32 %v566_v33, %v415_v31  ;;  %v1227_v37 = vpop.f32.mrb[3].mxu1 }
 0x1d8   : > { %v1044_v38 = vadd.f32 %v1030_v35, %v1029_v34  ;;  %v1040_v49 = vmul.f32 2.0, %v1031_v36 }
 0x1d9   : > { %v719_v39 = vpop.f32.mrb[4].mxu1 }
 0x1da   : > { %v1032_v40 = vsub.f32 %v719_v39, %v1029_v34  ;;  %v1241_v41 = vpop.f32.mrb[5].mxu1  ;;  %v1045_v50 = vadd.f32 %v1044_v38, %v1041_v45  ;;  %v1042_v57 = vadd.f32 %v1041_v45, %v1040_v49 }
 0x1dd   : > { %v872_v42 = vpop.f32.mrb[6].mxu1 }
 0x1de   : > { %v1033_v43 = vsub.f32 %v872_v42, %v1030_v35  ;;  %v1255_v44 = vpop.f32.mrb[7].mxu1 }
 0x1e0   : > { %v1038_v47 = vadd.f32 %v1033_v43, %v1032_v40 }
 0x1e1   : > { %v1025_v48 = vpop.f32.mrb[8].mxu1 }
 0x1e2   : > { %v1034_v51 = vsub.f32 %v1025_v48, %v1031_v36  ;;  %v1039_v52 = vadd.f32 %v1038_v47, %v1036_v46  ;;  %v1269_v53 = vpop.f32.mrb[9].mxu1 }
 0x1e4   : > { %v1035_v54 = vmul.f32 2.0, %v1034_v51  ;;  %v1046_v55 = vmul.f32 %v1045_v50, %v1039_v52 }
 0x1e6   : > { %v1037_v56 = vadd.f32 %v1036_v46, %v1035_v54  ;;  %1327 = vrcp.f32 %v1046_v55 }
 0x1e8   : > { %v1043_v58 = vmul.f32 %v1042_v57, %v1037_v56 }
 0x1f0   : > { %v1328_v59 = vpop.eup %1327 }
 0x1f1   : > { %v1048_v60 = vmul.f32 %v1328_v59, %v1043_v58 }
 0x1f3   : > { %v1050_v61 = vsel %vm1049_vm2, %v1048_v60, 0.0 }
 0x1f4   : > { %1051 = vadd.xlane.f32.xlu0 %v1050_v61 }
 0x281   : > { %v1052_v62 = vpop.xlane.xlu0 %1051 }
 0x282   : > { %v1054_v63 = vsel %vm1053_vm3, %v1052_v62, 0.0 }
 0x283   : > { %v1055_v0 = vrot.slane %v1054_v63, 4 }
 0x285   : > { %v1056_v1 = vadd.f32 %v1055_v0, %v1054_v63 }
 0x287   : > { %v1057_v2 = vrot.slane %v1056_v1, 2 }
 0x289   : > { %v1058_v3 = vadd.f32 %v1057_v2, %v1056_v1 }
 0x28b   : > { %v1059_v4 = vrot.slane %v1058_v3, 1 }
 0x28d   : > { %v1060_v5 = vadd.f32 %v1059_v4, %v1058_v3 }
 0x28f   : > { %1062 = vst.msk [vmem:[%s254_s20] sm:$0x1] %vm1061_vm4, %v1060_v5 }
 0x290 PF: > { %s16_s18 = sadd.s32 1, %s1354_s18  }
 0x291   : > { %p13_p1 = scmp.ge.s32.totalorder %s16_s18, 4  }
 0x293   :  { %15 = sbr.rel (!%p13_p1) target bundleno = 1 (0x1), region = 78 }
 0x29a   :  { %1080 = vsyncpa [#allocation3], 1 }
 0x29b   :  { %1082 = vsyncpa [#allocation3 + $0x1], 1 }

</bundles_post_ra>
